<compile_context>
chip_gen: v5e
topology: v5e:2x2
jax: 0.10.0
libtpu: 0.0.40
codegen_flags: <defaults>
</compile_context>

<pallas_src>
import math

import jax
import jax.numpy as jnp
from jax.experimental import pallas as pl
from jax.experimental.pallas import tpu as pltpu


def _round_up(x, m):
    return (x + m - 1) // m * m


def _linear_kernel(x_ref, w_ref, b_ref, o_ref, acc_ref):
    # Accumulate over the K grid axis (innermost, "arbitrary").
    @pl.when(pl.program_id(2) == 0)
    def _init():
        acc_ref[...] = jnp.zeros_like(acc_ref)

    acc_ref[...] += jnp.dot(
        x_ref[...], w_ref[...], preferred_element_type=jnp.float32
    )

    @pl.when(pl.program_id(2) == pl.num_programs(2) - 1)
    def _finalize():
        # Bias add stays in f32; cast only on the final store (v5e-friendly).
        o_ref[...] = (acc_ref[...] + b_ref[...].astype(jnp.float32)).astype(o_ref.dtype)


def action_top_forward(x, w_t, b, *, compute_dtype=None):
    """Tiled Pallas forward for ActionTop's Linear top.

    x:   (B, Din)     float32
    w_t: (Din, Dout)  float32   (transposed PyTorch weight, so y = x @ w_t)
    b:   (1, Dout)    float32
    compute_dtype: optionally cast x / w_t (e.g. jnp.bfloat16 on v6e/v7x for
        2x MXU throughput and half the HBM traffic); accumulation and bias add
        stay f32. Default None keeps exact f32 semantics.
    """
    B, Din = x.shape
    Din_w, Dout = w_t.shape
    assert Din == Din_w, (Din, Din_w)
    out_dtype = x.dtype

    # ---- lane-dense padding + tile selection -------------------------------
    Din_p = _round_up(Din, 128)
    tk = Din_p if Din_p <= 512 else 512
    Din_p = _round_up(Din_p, tk)

    Dout_p = _round_up(Dout, 128)
    tn = Dout_p if Dout_p <= 256 else 256
    Dout_p = _round_up(Dout_p, tn)

    tm = min(_round_up(B, 8), 256)
    B_p = _round_up(B, tm)

    cdt = compute_dtype if compute_dtype is not None else x.dtype
    x_p = jnp.pad(x, ((0, B_p - B), (0, Din_p - Din))).astype(cdt)
    w_p = jnp.pad(w_t, ((0, Din_p - Din), (0, Dout_p - Dout))).astype(cdt)
    b_p = jnp.pad(b, ((0, 0), (0, Dout_p - Dout))).astype(jnp.float32)

    grid = (B_p // tm, Dout_p // tn, Din_p // tk)

    y_p = pl.pallas_call(
        _linear_kernel,
        out_shape=jax.ShapeDtypeStruct((B_p, Dout_p), out_dtype),
        grid_spec=pltpu.PrefetchScalarGridSpec(
            num_scalar_prefetch=0,
            grid=grid,
            in_specs=[
                # x streams over (batch, K) tiles.
                pl.BlockSpec((tm, tk), lambda i, j, k: (i, k)),
                # Weight block index does NOT depend on the batch axis i, so it
                # is not re-fetched while only the batch tile changes.
                pl.BlockSpec((tk, tn), lambda i, j, k: (k, j)),
                # Bias row, tiled along output features only.
                pl.BlockSpec((1, tn), lambda i, j, k: (0, j)),
            ],
            out_specs=pl.BlockSpec((tm, tn), lambda i, j, k: (i, j)),
            scratch_shapes=[pltpu.VMEM((tm, tn), jnp.float32)],
        ),
        compiler_params=pltpu.CompilerParams(
            dimension_semantics=("parallel", "parallel", "arbitrary"),
        ),
        cost_estimate=pl.CostEstimate(
            flops=2 * B * Din * Dout,
            transcendentals=0,
            bytes_accessed=4 * (B * Din + Din * Dout + B * Dout),
        ),
    )(x_p, w_p, b_p)

    return y_p[:B, :Dout]


# Below this many FLOPs, custom-call launch + per-step overhead dwarfs the
# work; let XLA's fused matmul handle it.
_PALLAS_MIN_FLOPS = 1 << 20


class ActionTop:
    """JAX/Pallas mirror of the PyTorch ActionTop module."""

    def __init__(self, input_shape, output_shape, key):
        if output_shape:
            self.output_shape = output_shape
            # Deterministic init mimicking nn.Linear's default:
            # U(-1/sqrt(fan_in), 1/sqrt(fan_in)) for both weight and bias.
            k_w, k_b = jax.random.split(key)
            bound = 1.0 / math.sqrt(input_shape)
            # PyTorch stores weight as (out, in); keep transposed (in, out)
            # layout for the kernel's x @ W matmul.
            w = jax.random.uniform(
                k_w, (output_shape, input_shape), jnp.float32, -bound, bound
            )
            self.w_t = jnp.transpose(w)                  # (Din, Dout)
            self.b = jax.random.uniform(
                k_b, (1, output_shape), jnp.float32, -bound, bound
            )
            self._identity = False
        else:
            self.output_shape = input_shape
            self._identity = True

    def __call__(self, x):
        if self._identity:
            return x  # nn.Identity: no kernel needed.
        B = x.shape[0]
        Din, Dout = self.w_t.shape
        if 2 * B * Din * Dout < _PALLAS_MIN_FLOPS:
            # Tiny head: skip Pallas, let XLA fuse the linear.
            return x @ self.w_t + self.b
        return action_top_forward(x, self.w_t, self.b)


if __name__ == "__main__":
    key = jax.random.PRNGKey(0)
    k_param, k_x, k_x2 = jax.random.split(key, 3)

    # Shapes chosen so the tiled Pallas path is exercised end-to-end:
    # B=512 -> 2 batch tiles, Din=640 -> padded 1024 / 2 K tiles,
    # Dout=384 -> padded 512 / 2 N tiles (ragged padding + K accumulation).
    batch, in_features, out_features = 512, 640, 384
    top = ActionTop(in_features, out_features, k_param)
    x = jax.random.normal(k_x, (batch, in_features), jnp.float32)
    y = jax.block_until_ready(top(x))

    y_ref = x @ top.w_t + top.b
    assert y.shape == (batch, out_features)
    assert jnp.allclose(y, y_ref, atol=2e-4, rtol=2e-4), float(
        jnp.max(jnp.abs(y - y_ref))
    )

    # Tiny shapes: force the Pallas path once (single-tile grid, padded lanes)...
    batch_s, din_s, dout_s = 4, 32, 16
    top_s = ActionTop(din_s, dout_s, k_param)
    x_s = jax.random.normal(k_x2, (batch_s, din_s), jnp.float32)
    y_s = jax.block_until_ready(action_top_forward(x_s, top_s.w_t, top_s.b))
    y_s_ref = x_s @ top_s.w_t + top_s.b
    assert y_s.shape == (batch_s, dout_s)
    assert jnp.allclose(y_s, y_s_ref, atol=1e-4, rtol=1e-4)
    # ...and check the module dispatch (falls back to fused jnp at this size).
    y_s2 = jax.block_until_ready(top_s(x_s))
    assert jnp.allclose(y_s2, y_s_ref, atol=1e-5, rtol=1e-5)

    # Identity top (output_shape falsy).
    top_id = ActionTop(in_features, None, k_param)
    y_id = jax.block_until_ready(top_id(x))
    assert jnp.array_equal(y_id, x)

    print("KERNEL_OK")
</pallas_src>

<mosaic_0001>
module attributes {stable_mosaic.version = 11 : i64} {
  func.func @_linear_kernel(%arg0: i32, %arg1: i32, %arg2: i32, %arg3: memref<256x512xf32, #tpu.memory_space<vmem>>, %arg4: memref<512x256xf32, #tpu.memory_space<vmem>>, %arg5: memref<1x256xf32, #tpu.memory_space<vmem>>, %arg6: memref<256x256xf32, #tpu.memory_space<vmem>>, %arg7: memref<256x256xf32, #tpu.memory_space<vmem>>) attributes {dimension_semantics = [#tpu.dimension_semantics<parallel>, #tpu.dimension_semantics<parallel>, #tpu.dimension_semantics<arbitrary>], iteration_bounds = array<i64: 2, 2, 2>, scalar_prefetch = 0 : i64, scratch_operands = 1 : i64, tpu.core_type = #tpu.core_type<tc>, window_params = [{transform_indices = @transform_0, window_bounds = array<i64: 256, 512>}, {transform_indices = @transform_1, window_bounds = array<i64: 512, 256>}, {transform_indices = @transform_2, window_bounds = array<i64: 1, 256>}, {transform_indices = @transform_3, window_bounds = array<i64: 256, 256>}]} {
    %c0_i32 = arith.constant 0 : i32
    %0 = arith.cmpi eq, %arg2, %c0_i32 : i32
    %1 = arith.extui %0 : i1 to i32
    %c0_i32_0 = arith.constant 0 : i32
    %2 = arith.cmpi ne, %1, %c0_i32_0 : i32
    scf.if %2 {
      %cst_9 = arith.constant 0.000000e+00 : f32
      %12 = vector.broadcast %cst_9 : f32 to vector<256x256xf32>
      %c0_10 = arith.constant 0 : index
      %c0_11 = arith.constant 0 : index
      %13 = vector.load %arg7[%c0_10, %c0_11] : memref<256x256xf32, #tpu.memory_space<vmem>>, vector<256x256xf32>
      tpu.vector_store %arg7[%c0_10, %c0_11], %12 {strides = array<i32>} : memref<256x256xf32, #tpu.memory_space<vmem>>, vector<256x256xf32>,
    } else {
    }
    %c0 = arith.constant 0 : index
    %c0_1 = arith.constant 0 : index
    %3 = vector.load %arg7[%c0, %c0_1] : memref<256x256xf32, #tpu.memory_space<vmem>>, vector<256x256xf32>
    %c0_2 = arith.constant 0 : index
    %c0_3 = arith.constant 0 : index
    %4 = vector.load %arg3[%c0_2, %c0_3] : memref<256x512xf32, #tpu.memory_space<vmem>>, vector<256x512xf32>
    %c0_4 = arith.constant 0 : index
    %c0_5 = arith.constant 0 : index
    %5 = vector.load %arg4[%c0_4, %c0_5] : memref<512x256xf32, #tpu.memory_space<vmem>>, vector<512x256xf32>
    %cst = arith.constant dense<0.000000e+00> : vector<256x256xf32>
    %6 = tpu.matmul %4, %5, %cst {dimension_numbers = #tpu.dot_dimension_numbers<[1], [0], [0], [1], [0, 0, 1, 1], [], []>} : vector<256x512xf32>, vector<512x256xf32>, vector<256x256xf32> -> vector<256x256xf32>
    %7 = arith.addf %3, %6 : vector<256x256xf32>
    %c0_6 = arith.constant 0 : index
    %c0_7 = arith.constant 0 : index
    %8 = vector.load %arg7[%c0_6, %c0_7] : memref<256x256xf32, #tpu.memory_space<vmem>>, vector<256x256xf32>
    tpu.vector_store %arg7[%c0_6, %c0_7], %7 {strides = array<i32>} : memref<256x256xf32, #tpu.memory_space<vmem>>, vector<256x256xf32>,
    %c1_i32 = arith.constant 1 : i32
    %9 = arith.cmpi eq, %arg2, %c1_i32 : i32
    %10 = arith.extui %9 : i1 to i32
    %c0_i32_8 = arith.constant 0 : i32
    %11 = arith.cmpi ne, %10, %c0_i32_8 : i32
    scf.if %11 {
      %c0_9 = arith.constant 0 : index
      %c0_10 = arith.constant 0 : index
      %12 = vector.load %arg7[%c0_9, %c0_10] : memref<256x256xf32, #tpu.memory_space<vmem>>, vector<256x256xf32>
      %c0_11 = arith.constant 0 : index
      %c0_12 = arith.constant 0 : index
      %13 = vector.load %arg5[%c0_11, %c0_12] : memref<1x256xf32, #tpu.memory_space<vmem>>, vector<1x256xf32>
      %14 = vector.broadcast %13 : vector<1x256xf32> to vector<256x256xf32>
      %15 = arith.addf %12, %14 : vector<256x256xf32>
      %c0_13 = arith.constant 0 : index
      %c0_14 = arith.constant 0 : index
      %16 = vector.load %arg6[%c0_13, %c0_14] : memref<256x256xf32, #tpu.memory_space<vmem>>, vector<256x256xf32>
      tpu.vector_store %arg6[%c0_13, %c0_14], %15 {strides = array<i32>} : memref<256x256xf32, #tpu.memory_space<vmem>>, vector<256x256xf32>,
    } else {
    }
    return
  }
  func.func @transform_0(%arg0: i32, %arg1: i32, %arg2: i32) -> (i32, i32) {
    %c0_i32 = arith.constant 0 : i32
    return %arg0, %arg2 : i32, i32
  }
  func.func @transform_1(%arg0: i32, %arg1: i32, %arg2: i32) -> (i32, i32) {
    %c0_i32 = arith.constant 0 : i32
    return %arg2, %arg1 : i32, i32
  }
  func.func @transform_2(%arg0: i32, %arg1: i32, %arg2: i32) -> (i32, i32) {
    %c0_i32 = arith.constant 0 : i32
    %c0_i32_0 = arith.constant 0 : i32
    return %c0_i32, %arg1 : i32, i32
  }
  func.func @transform_3(%arg0: i32, %arg1: i32, %arg2: i32) -> (i32, i32) {
    %c0_i32 = arith.constant 0 : i32
    return %arg0, %arg1 : i32, i32
  }
}

</mosaic_0001>

<bundles_post_ra>
// kernel: tpu_custom_call.1
= control target key start
LH: loop header
LB: loop body
LE: loop exit
PB: predicated region body
PF: predicated region fallthrough
CT: control target
= control target key end

     0   :  { %s3780_s0 = inlined_call_operand.hbm [shape: f32[512,1024], index: 0, kind: input, shape index: {}]   ;;  %s3781_s1 = inlined_call_operand.hbm [shape: f32[1024,512], index: 1, kind: input, shape index: {}]   ;;  %s3782_s2 = inlined_call_operand.hbm [shape: f32[1,512], index: 2, kind: input, shape index: {}]   ;;  %s3783_s3 = inlined_call_operand.hbm [shape: f32[512,512], index: 3, kind: output, shape index: {}]  }
   0x1   :  { %3797 = sst [smem:[#allocation28_spill]] %s3780_s0 }
   0x2   :  { %3798 = sst [smem:[#allocation29_spill]] %s3781_s1 }
   0x3   :  { %3799 = sst [smem:[#allocation30_spill]] %s3782_s2 }
   0x4   :  { %3800 = sst [smem:[#allocation31_spill]] %s3783_s3 }
   0x5   :  { %8 = vsyncpa [#allocation4], 0 }
   0x6   :  { %10 = vsyncpa [#allocation4 + $0x1], 0 }
   0x7   :  { %11 = vsyncpa [#allocation7], 0 }
   0x8   :  { %13 = vsyncpa [#allocation7 + $0x1], 0 }
   0x9   :  { %14 = vsyncpa [#allocation5], 0 }
   0xa   :  { %16 = vsyncpa [#allocation5 + $0x1], 0  ;;  %s2715_s12 = smov 0   ;;  %s2717_s13 = smov 0  }
   0xb   :  { %s2719_s14 = smov 0   ;;  %s2721_s15 = smov 0  }
   0xc   :  { %s2723_s16 = smov 0   ;;  %s2725_s17 = smov 0  }
   0xd   :  { %s2727_s18 = smov 0   ;;  %s2729_s19 = smov 0  }
   0xe   :  { %s2731_s20 = smov 0   ;;  %s2733_s21 = smov 0  }
   0xf   :  { %s2735_s22 = smov 0   ;;  %s2737_s23 = smov 0  }
  0x10   :  { %s2739_s24 = smov 0   ;;  %s2741_s25 = smov 0  }
  0x11   :  { %s2743_s26 = smov 0   ;;  %s2745_s27 = smov 0  }
  0x12   :  { %s2747_s28 = smov 0   ;;  %s2749_s29 = smov 0  }
  0x13   :  { %s2751_s30 = smov 0  }
  0x14 LB: > { %3801 = sst [smem:[#allocation14_spill]] %s2612_s12  ;;  %s34_s4 = sadd.s32 1, %s2672_s27  ;;  %s2684_s30 = sphi %s2751_s30, %s22_s30   ;;  %s2680_s29 = sphi %s2749_s29, %s3851_s29   ;;  %s2676_s28 = sphi %s2747_s28, %s3863_s28   ;;  %s2672_s27 = sphi %s2745_s27, %s3848_s27   ;;  %s2668_s26 = sphi %s2743_s26, %s3847_s26   ;;  %s2664_s25 = sphi %s2741_s25, %s3862_s25   ;;  %s2660_s24 = sphi %s2739_s24, %s3861_s24   ;;  %s2656_s23 = sphi %s2737_s23, %s3860_s23   ;;  %s2652_s22 = sphi %s2735_s22, %s3859_s22   ;;  %s2648_s21 = sphi %s2733_s21, %s3858_s21   ;;  %s2644_s20 = sphi %s2731_s20, %s3845_s20   ;;  %s2640_s19 = sphi %s2729_s19, %s3857_s19   ;;  %s2636_s18 = sphi %s2727_s18, %s3856_s18   ;;  %s2632_s17 = sphi %s2725_s17, %s3855_s17   ;;  %s2628_s16 = sphi %s2723_s16, %s3854_s16   ;;  %s2624_s15 = sphi %s2721_s15, %s3853_s15   ;;  %s2620_s14 = sphi %s2719_s14, %s3852_s14   ;;  %s2616_s13 = sphi %s2717_s13, %s3850_s13   ;;  %s2612_s12 = sphi %s2715_s12, %s3843_s12  }
  0x15   : > { %3802 = sst [smem:[#allocation15_spill]] %s2616_s13  ;;  %s37_s5 = sadd.s32 1, %s2676_s28 }
  0x16   : > { %3803 = sst [smem:[#allocation16_spill]] %s2624_s15  ;;  %p35_p0 = scmp.ge.s32.totalorder %s34_s4, 2 }
  0x17   : > { %3804 = sst [smem:[#allocation17_spill]] %s2644_s20  ;;  %p58_p1 = scmp.eq.s32.totalorder %s2684_s30, 0 }
  0x18   : > { %3805 = sst [smem:[#allocation18_spill]] %s2660_s24  ;;  %s78_s6 = sadd.s32 1, %s2644_s20 }
  0x19   : > { %3806 = sst [smem:[#allocation19_spill]] %s2664_s25  ;;  %p85_p2 = scmp.ne.s32.totalorder %s2644_s20, %s2640_s19 }
  0x1a   : > { %3807 = sst [smem:[#allocation20_spill]] %s2668_s26  ;;  %s3865_s4 = smov (%p35_p0, %s34_s4), 0 }
  0x1b   : > { %3808 = sst [smem:[#allocation21_spill]] %s2672_s27  ;;  %s3867_s5 = smov (!%p35_p0, %s37_s5), %s2676_s28 }
  0x1c   : > { %3809 = sst [smem:[#allocation22_spill]] %s2680_s29  ;;  %s2823_s7 = ssub.s32 %s2672_s27, %s3865_s4 }
  0x1d   : > { %3810 = sst [smem:[#allocation23_spill]] %s3865_s4  ;;  %p2827_p3 = por %p85_p2, %p58_p1 }
  0x1e   : > { %p39_p4 = scmp.ge.s32.totalorder %s3867_s5, 2  ;;  %p91_p5 = scmp.ne.s32.totalorder %s2640_s19, %s2636_s18 }
  0x1f   : > { %p3795_p6 = scmp.lt.s32.totalorder %s2684_s30, 8  ;;  %s194_s10 = sand.u32 1, %s2684_s30  }
  0x20   : > { %s2838_s9 = scalar_select %p39_p4, 0, %s3867_s5  }
  0x21   : > { %s196_s3 = sand.u32 1, %s2644_s20   ;;  %s3789_s25 = sshll.u32 %s2676_s28, 1 }
  0x22   : > { %3812 = sst [smem:[#allocation24_spill]] %s2838_s9  ;;  %s2843_s11 = ssub.s32 %s2676_s28, %s2838_s9 }
  0x23   : > { %s75_s4 = sor.u32 %s2843_s11, %s2823_s7  ;;  %s2099_s26 = sshll.u32 %s196_s3, 10 }
  0x24   : > { %p76_p7 = scmp.eq.s32.totalorder %s75_s4, 0  ;;  %s2121_s2 = sshll.u32 %s2672_s27, 8 }
  0x25   : > { %s198_s12 = scalar_lea.vmem [#allocation6], %s2099_s26  ;;  %s204_s15 = sadd.s32 %s2121_s2, %s3789_s25 }
  0x26   : > { %s2850_s24 = scalar_select %p76_p7, %s2644_s20, %s78_s6  }
  0x27   : > { %s209_s13 = sshll.u32 %s198_s12, 4  ;;  %s2103_s9 = sshll.u32 %s204_s15, 3  ;;  %s210_s13 = int_to_ptr.vmem [resolvable:$true] %s209_s13 }
  0x28   : > { %3813 = sst [smem:[#allocation25_spill]] %s2850_s24  ;;  %p2135_p8 = pnand %p3795_p6, %p2827_p3 }
  0x29   : > { %s3814_s1 = sld [smem:[#allocation29_spill]]  ;;  %s2862_s2 = scalar_lea.sflag [#allocation7], %s194_s10 }
  0x2a   : > { %s3790_s26 = smov 512   ;;  %s2687_s15 = smov 256  }
  0x2b   : > { %s2688_s8 = smov 16   ;;  %p2106_p9 = scmp.ge.s32.totalorder %s2684_s30, 1 }
  0x2c   : > { %p236_p10 = scmp.lt.s32.totalorder %s2684_s30, 9  ;;  %s41_s3 = sadd.s32 1, %s2680_s29 }
  0x2d   : > { %s3869_s3 = smov (!%p39_p4, %s41_s3), %s2680_s29  ;;  %s50_s10 = sadd.s32 1, %s2656_s23 }
  0x2e   : > { %p2868_p11 = pnand %p2106_p9, %p236_p10  ;;  %p57_p12 = scmp.ne.s32.totalorder %s2656_s23, %s2652_s22 }
  0x2f   : > { %s206_s6 = scalar_lea.hbm %s3814_s1, %s2103_s9  ;;  %p43_p13 = scmp.ge.s32.totalorder %s3869_s3, 2 }
  0x30   : > { %s207_s12 = sshll.u32 %s206_s6, 4  ;;  %p63_p0 = scmp.ne.s32.totalorder %s2652_s22, %s2648_s21  ;;  %s208_s12 = int_to_ptr.hbm [resolvable:$true] %s207_s12 }
  0x31   : > { %2137 = dma.hbm_to_vmem [thread:$0]  (!%p2135_p8), %s208_s12, 16384, %s210_s13, %s2862_s2, %s3790_s26, %s2687_s15, %s2688_s8  }
  0x32   : > { %s3815_s9 = scalar_select %p2868_p11, 1, 0 }
  0x33   : > { %p2883_p2 = por %p58_p1, %p57_p12  ;;  %s132_s4 = sadd.s32 1, %s2620_s14 }
  0x34   : > { %3816 = sst [smem:[#allocation26_spill]] %s3815_s9  ;;  %s3871_s3 = smov (%p43_p13, %s3869_s3), 0 }
  0x35   : > { %3818 = sst [smem:[#allocation27_spill]] %s3871_s3  ;;  %s169_s6 = sand.u32 1, %s2656_s23  }
  0x36   : > { %s2096_s12 = sshll.u32 %s2672_s27, 2  ;;  %s45_s5 = ssub.s32 %s2680_s29, %s3871_s3 }
  0x37   : > { %s47_s15 = sor.u32 %s2823_s7, %s45_s5  ;;  %s129_s8 = sor.u32 %s2843_s11, %s45_s5 }
  0x38   : > { %p48_p3 = scmp.eq.s32.totalorder %s47_s15, 0  ;;  %p130_p4 = scmp.eq.s32.totalorder %s129_s8, 0 }
  0x39   : > { %s2094_s25 = sshll.u32 %s169_s6, 10  ;;  %s2120_s26 = sshll.u32 %s2680_s29, 8 }
  0x3a   : > { %s2898_s1 = scalar_select %p48_p3, %s2656_s23, %s50_s10  }
  0x3b   : > { %s2901_s24 = scalar_select %p130_p4, %s2620_s14, %s132_s4  }
  0x3c   : > { %s179_s20 = sadd.s32 %s2120_s26, %s2096_s12  ;;  %s173_s27 = scalar_lea.vmem [#allocation3], %s2094_s25 }
  0x3d   : > { %s2098_s9 = sshll.u32 %s179_s20, 3  ;;  %s184_s3 = sshll.u32 %s173_s27, 4  ;;  %s185_s3 = int_to_ptr.vmem [resolvable:$true] %s184_s3 }
  0x3e   : > { %s3819_s0 = sld [smem:[#allocation28_spill]]  ;;  %p2132_p7 = pnand %p3795_p6, %p2883_p2 }
  0x3f   : > { %s3820_s20 = sld [smem:[#allocation16_spill]]  ;;  %s170_s27 = scalar_lea.sflag [#allocation4], %s169_s6 }
  0x40   : > { %s3821_s25 = sld [smem:[#allocation15_spill]]  ;;  %s2689_s26 = smov 1024  }
  0x41   : > { %s2690_s4 = smov 32   ;;  %s3822_s12 = smov 512  }
  0x42   : > { %s3823_s8 = sld [smem:[#allocation14_spill]]  ;;  %s2091_s13 = sadd.s32 4294967294, %s2684_s30  }
  0x43   : > { %p102_p9 = scmp.eq.s32.totalorder %s2843_s11, 0  ;;  %s104_s7 = sadd.s32 1, %s2632_s17 }
  0x44   : > { %s181_s15 = scalar_lea.hbm %s3819_s0, %s2098_s9  ;;  %s2912_s9 = sadd.s32 4294967295, %s2684_s30  }
  0x45   : > { %s182_s10 = sshll.u32 %s181_s15, 4  ;;  %p64_p8 = scmp.eq.s32.totalorder %s2912_s9, 0  ;;  %s183_s10 = int_to_ptr.hbm [resolvable:$true] %s182_s10 }
  0x46   : > { %2134 = dma.hbm_to_vmem [thread:$0]  (!%p2132_p7), %s183_s10, 16384, %s185_s3, %s170_s27, %s2689_s26, %s3822_s12, %s2690_s4  }
  0x47   : > { %p111_p10 = scmp.ne.s32.totalorder %s2632_s17, %s2628_s16  ;;  %p2923_p12 = por %p64_p8, %p63_p0 }
  0x48   : > { %p2930_p13 = por %p91_p5, %p64_p8  ;;  %p117_p3 = scmp.ne.s32.totalorder %s2628_s16, %s3820_s20 }
  0x49   : > { %s2935_s3 = scalar_select %p102_p9, %s2632_s17, %s104_s7  }
  0x4a   : > { %p2939_p2 = por %p111_p10, %p58_p1  ;;  %p142_p4 = scmp.ne.s32.totalorder %s2620_s14, %s3821_s25 }
  0x4b   : > { %p143_p0 = scmp.eq.s32.totalorder %s2912_s9, 7  ;;  %p2948_p7 = por %p117_p3, %p64_p8 }
  0x4c   : > { %p148_p5 = scmp.ne.s32.totalorder %s3821_s25, %s3823_s8  ;;  %p149_p9 = scmp.eq.s32.totalorder %s2091_s13, 7 }
  0x4d   : > { %p2954_p6 = por %p143_p0, %p142_p4  ;;  %s221_s11 = sand.u32 1, %s2632_s17  }
  0x4e   : > { %s3829_s10 = sshll.u32 %s2676_s28, 1  ;;  %s3830_s20 = sld [smem:[#allocation30_spill]] }
  0x4f   : > { %p2964_p1 = por %p149_p9, %p148_p5  ;;  %s2104_s7 = sshll.u32 %s221_s11, 1 }
  0x50   : > { %s223_s29 = scalar_lea.vmem [#allocation8], %s2104_s7  ;;  %p3832_p8 = scmp.lt.s32.totalorder %s2684_s30, 8 }
  0x51   : > { %s231_s25 = sshll.u32 %s223_s29, 4  ;;  %s242_s13 = sand.u32 (!%p2868_p11), 1, %s2652_s22   ;;  %s232_s25 = int_to_ptr.vmem [resolvable:$true] %s231_s25 }
  0x52   : > { %p2138_p10 = pnand %p3832_p8, %p2939_p2  ;;  %240 = sbr.rel (%p2868_p11) target bundleno = 946 (0x3b2), region = 32 }
  0x53   : > { %s243_s27 = scalar_lea.sflag (!%p2868_p11), [#allocation4], %s242_s13 }
  0x54   : > { %s227_s4 = scalar_lea.hbm %s3830_s20, %s3829_s10  ;;  %s2107_s10 = sshll.u32 (!%p2868_p11), %s242_s13, 10 }
  0x55   : > { %s229_s0 = sshll.u32 %s227_s4, 4  ;;  %s2976_s26 = scalar_lea.vmem (!%p2868_p11), [#allocation3], %s2107_s10  ;;  %s230_s0 = int_to_ptr.hbm [resolvable:$true] %s229_s0 }
  0x56   : > { %2140 = dma.hbm_to_vmem [thread:$0]  (!%p2138_p10), %s230_s0, 32, %s232_s25, %s2862_s2  }
  0x57   : > { %2595 = dma.done.wait (%p2923_p12), %s243_s27, 16384  }
  0x58   : > { %2597 = vsyncadd (%p2923_p12), %s243_s27, 4294950912  ;;  %s252_s29 = sand.u32 1, %s2912_s9   ;;  %s254_s0 = sand.u32 1, %s2640_s19  }
  0x59   : > { %s2108_s2 = sshll.u32 %s254_s0, 10  ;;  %s253_s15 = scalar_lea.sflag [#allocation7], %s252_s29 }
  0x5a   : > { %s2984_s11 = scalar_lea.vmem [#allocation6], %s2108_s2 }
  0x5b   : > { %2599 = dma.done.wait (%p2930_p13), %s253_s15, 16384  }
  0x5c   : > { %2601 = vsyncadd (%p2930_p13), %s253_s15, 4294950912  ;;  %s264_s20 = sand.u32 1, %s2628_s16  }
  0x5d   : > { %s2991_s4 = sshll.u32 %s264_s20, 1 }
  0x5e   : > { %s266_s6 = scalar_lea.vmem [#allocation8], %s2991_s4 }
  0x5f   : > { %2603 = dma.done.wait (%p2948_p7), %s253_s15, 32  }
  0x60   : > { %2605 = vsyncadd (%p2948_p7), %s253_s15, 4294967264  ;;  %s3834_s9 = sld [smem:[#allocation15_spill]] }
  0x61   : > { %s3835_s5 = sld [smem:[#allocation18_spill]] }
  0x66   : > { %s297_s7 = sand.u32 1, %s3834_s9  }
  0x67   : > { %s2110_s25 = sshll.u32 %s297_s7, 9  ;;  %p2111_p11 = scmp.ne.s32.totalorder %s3835_s5, 0 }
  0x68   : > { %s3001_s8 = scalar_lea.vmem [#allocation9], %s2110_s25 }
  0x69   : > { %310 = sbr.rel (%p2111_p11) target bundleno = 175 (0xaf), region = 48 }
  0x6e   : > { %v2691_v0 = vmov 0.0  }
  0x6f   : > { %311 = vst [vmem:[#allocation2 + $0xb0] sm:$0xff] %v2691_v0 }
  0x70   : > { %312 = vst [vmem:[#allocation2 + $0x1b0] sm:$0xff] %v2691_v0 }
  0x71   : > { %313 = vst [vmem:[#allocation2 + $0xd8] sm:$0xff] %v2691_v0 }
  0x72   : > { %314 = vst [vmem:[#allocation2 + $0x18] sm:$0xff] %v2691_v0 }
  0x73   : > { %315 = vst [vmem:[#allocation2 + $0x50] sm:$0xff] %v2691_v0 }
  0x74   : > { %316 = vst [vmem:[#allocation2 + $0x168] sm:$0xff] %v2691_v0 }
  0x75   : > { %317 = vst [vmem:[#allocation2 + $0x130] sm:$0xff] %v2691_v0 }
  0x76   : > { %318 = vst [vmem:[#allocation2 + $0x48] sm:$0xff] %v2691_v0 }
  0x77   : > { %319 = vst [vmem:[#allocation2 + $0x180] sm:$0xff] %v2691_v0 }
  0x78   : > { %320 = vst [vmem:[#allocation2 + $0x110] sm:$0xff] %v2691_v0 }
  0x79   : > { %321 = vst [vmem:[#allocation2 + $0x118] sm:$0xff] %v2691_v0 }
  0x7a   : > { %322 = vst [vmem:[#allocation2 + $0x98] sm:$0xff] %v2691_v0 }
  0x7b   : > { %323 = vst [vmem:[#allocation2 + $0x120] sm:$0xff] %v2691_v0 }
  0x7c   : > { %324 = vst [vmem:[#allocation2 + $0x150] sm:$0xff] %v2691_v0 }
  0x7d   : > { %325 = vst [vmem:[#allocation2 + $0x108] sm:$0xff] %v2691_v0 }
  0x7e   : > { %326 = vst [vmem:[#allocation2 + $0x60] sm:$0xff] %v2691_v0 }
  0x7f   : > { %327 = vst [vmem:[#allocation2 + $0xe0] sm:$0xff] %v2691_v0 }
  0x80   : > { %328 = vst [vmem:[#allocation2 + $0x188] sm:$0xff] %v2691_v0 }
  0x81   : > { %329 = vst [vmem:[#allocation2 + $0x138] sm:$0xff] %v2691_v0 }
  0x82   : > { %330 = vst [vmem:[#allocation2 + $0x140] sm:$0xff] %v2691_v0 }
  0x83   : > { %331 = vst [vmem:[#allocation2 + $0x80] sm:$0xff] %v2691_v0 }
  0x84   : > { %332 = vst [vmem:[#allocation2 + $0x1a8] sm:$0xff] %v2691_v0 }
  0x85   : > { %333 = vst [vmem:[#allocation2 + $0x1b8] sm:$0xff] %v2691_v0 }
  0x86   : > { %334 = vst [vmem:[#allocation2 + $0x28] sm:$0xff] %v2691_v0 }
  0x87   : > { %335 = vst [vmem:[#allocation2 + $0x1e8] sm:$0xff] %v2691_v0 }
  0x88   : > { %336 = vst [vmem:[#allocation2 + $0xf8] sm:$0xff] %v2691_v0 }
  0x89   : > { %337 = vst [vmem:[#allocation2 + $0x160] sm:$0xff] %v2691_v0 }
  0x8a   : > { %338 = vst [vmem:[#allocation2 + $0x30] sm:$0xff] %v2691_v0 }
  0x8b   : > { %339 = vst [vmem:[#allocation2 + $0x1e0] sm:$0xff] %v2691_v0 }
  0x8c   : > { %340 = vst [vmem:[#allocation2] sm:$0xff] %v2691_v0 }
  0x8d   : > { %341 = vst [vmem:[#allocation2 + $0xf0] sm:$0xff] %v2691_v0 }
  0x8e   : > { %342 = vst [vmem:[#allocation2 + $0x8] sm:$0xff] %v2691_v0 }
  0x8f   : > { %343 = vst [vmem:[#allocation2 + $0x148] sm:$0xff] %v2691_v0 }
  0x90   : > { %344 = vst [vmem:[#allocation2 + $0x1d0] sm:$0xff] %v2691_v0 }
  0x91   : > { %345 = vst [vmem:[#allocation2 + $0x100] sm:$0xff] %v2691_v0 }
  0x92   : > { %346 = vst [vmem:[#allocation2 + $0xc8] sm:$0xff] %v2691_v0 }
  0x93   : > { %347 = vst [vmem:[#allocation2 + $0x40] sm:$0xff] %v2691_v0 }
  0x94   : > { %348 = vst [vmem:[#allocation2 + $0x1f8] sm:$0xff] %v2691_v0 }
  0x95   : > { %349 = vst [vmem:[#allocation2 + $0x20] sm:$0xff] %v2691_v0 }
  0x96   : > { %350 = vst [vmem:[#allocation2 + $0x128] sm:$0xff] %v2691_v0 }
  0x97   : > { %351 = vst [vmem:[#allocation2 + $0x1a0] sm:$0xff] %v2691_v0 }
  0x98   : > { %352 = vst [vmem:[#allocation2 + $0x1f0] sm:$0xff] %v2691_v0 }
  0x99   : > { %353 = vst [vmem:[#allocation2 + $0xe8] sm:$0xff] %v2691_v0 }
  0x9a   : > { %354 = vst [vmem:[#allocation2 + $0x78] sm:$0xff] %v2691_v0 }
  0x9b   : > { %355 = vst [vmem:[#allocation2 + $0x70] sm:$0xff] %v2691_v0 }
  0x9c   : > { %356 = vst [vmem:[#allocation2 + $0x90] sm:$0xff] %v2691_v0 }
  0x9d   : > { %357 = vst [vmem:[#allocation2 + $0x1d8] sm:$0xff] %v2691_v0 }
  0x9e   : > { %358 = vst [vmem:[#allocation2 + $0xd0] sm:$0xff] %v2691_v0 }
  0x9f   : > { %359 = vst [vmem:[#allocation2 + $0xb8] sm:$0xff] %v2691_v0 }
  0xa0   : > { %360 = vst [vmem:[#allocation2 + $0x88] sm:$0xff] %v2691_v0 }
  0xa1   : > { %361 = vst [vmem:[#allocation2 + $0xa8] sm:$0xff] %v2691_v0 }
  0xa2   : > { %362 = vst [vmem:[#allocation2 + $0x1c8] sm:$0xff] %v2691_v0 }
  0xa3   : > { %363 = vst [vmem:[#allocation2 + $0x170] sm:$0xff] %v2691_v0 }
  0xa4   : > { %364 = vst [vmem:[#allocation2 + $0x178] sm:$0xff] %v2691_v0 }
  0xa5   : > { %365 = vst [vmem:[#allocation2 + $0x68] sm:$0xff] %v2691_v0 }
  0xa6   : > { %366 = vst [vmem:[#allocation2 + $0x190] sm:$0xff] %v2691_v0 }
  0xa7   : > { %367 = vst [vmem:[#allocation2 + $0x198] sm:$0xff] %v2691_v0 }
  0xa8   : > { %368 = vst [vmem:[#allocation2 + $0x38] sm:$0xff] %v2691_v0 }
  0xa9   : > { %369 = vst [vmem:[#allocation2 + $0xc0] sm:$0xff] %v2691_v0 }
  0xaa   : > { %370 = vst [vmem:[#allocation2 + $0x1c0] sm:$0xff] %v2691_v0 }
  0xab   : > { %371 = vst [vmem:[#allocation2 + $0x158] sm:$0xff] %v2691_v0 }
  0xac   : > { %372 = vst [vmem:[#allocation2 + $0x10] sm:$0xff] %v2691_v0 }
  0xad   : > { %373 = vst [vmem:[#allocation2 + $0x58] sm:$0xff] %v2691_v0 }
  0xae   : > { %374 = vst [vmem:[#allocation2 + $0xa0] sm:$0xff] %v2691_v0 }
  0xaf PF: > { %v661_v1 = vld [vmem:[%s2984_s11 + $0x2f0] sm:$0xff]  ;;  %v659_v2 = vld [vmem:[%s2984_s11 + $0x2e0] sm:$0xff]  ;;  %v442_v0 = vld [vmem:[%s2976_s26 + $0x18] sm:$0xff]  ;;  %s3836_s21 = sld [smem:[#allocation18_spill]] }
  0xb0   : > { %v693_v3 = vld [vmem:[%s2984_s11 + $0x3f0] sm:$0xff]  ;;  %921 = vmatpush.msra.mxu2 %v661_v1  ;;  %v691_v7 = vld [vmem:[%s2984_s11 + $0x3e0] sm:$0xff]  ;;  %v662_v1 = vld [vmem:[%s2984_s11 + $0x2f8] sm:$0xff] }
  0xb1   : > { %1034 = vmatpush.msra.mxu3 %v693_v3  ;;  %v597_v4 = vld [vmem:[%s2984_s11 + $0xf0] sm:$0xff]  ;;  %v595_v8 = vld [vmem:[%s2984_s11 + $0xe0] sm:$0xff] }
  0xb2   : > { %v629_v5 = vld [vmem:[%s2984_s11 + $0x1f0] sm:$0xff]  ;;  %695 = vmatpush.msra.mxu0 %v597_v4  ;;  %v627_v9 = vld [vmem:[%s2984_s11 + $0x1e0] sm:$0xff]  ;;  %922 = vmatpush.msra.mxu2 %v659_v2  ;;  %v694_v2 = vld [vmem:[%s2984_s11 + $0x3f8] sm:$0xff] }
  0xb3   : > { %v657_v6 = vld [vmem:[%s2984_s11 + $0x2d0] sm:$0xff]  ;;  %808 = vmatpush.msra.mxu1 %v629_v5  ;;  %1035 = vmatpush.msra.mxu3 %v691_v7  ;;  %v655_v12 = vld [vmem:[%s2984_s11 + $0x2c0] sm:$0xff]  ;;  %v598_v7 = vld [vmem:[%s2984_s11 + $0xf8] sm:$0xff] }
  0xb4   : > { %v689_v10 = vld [vmem:[%s2984_s11 + $0x3d0] sm:$0xff]  ;;  %696 = vmatpush.msra.mxu0 %v595_v8  ;;  %v687_v14 = vld [vmem:[%s2984_s11 + $0x3c0] sm:$0xff]  ;;  %923 = vmatpush.msra.mxu2 %v657_v6  ;;  %v440_v6 = vld [vmem:[%s2976_s26 + $0x8] sm:$0xff] }
  0xb5   : > { %v593_v11 = vld [vmem:[%s2984_s11 + $0xd0] sm:$0xff]  ;;  %809 = vmatpush.msra.mxu1 %v627_v9  ;;  %1036 = vmatpush.msra.mxu3 %v689_v10  ;;  %v591_v15 = vld [vmem:[%s2984_s11 + $0xc0] sm:$0xff]  ;;  %v630_v8 = vld [vmem:[%s2984_s11 + $0x1f8] sm:$0xff]  ;;  %p2112_p12 = scmp.ne.s32.totalorder %s3836_s21, 1 }
  0xb6   : > { %v625_v13 = vld [vmem:[%s2984_s11 + $0x1d0] sm:$0xff]  ;;  %v623_v16 = vld [vmem:[%s2984_s11 + $0x1c0] sm:$0xff]  ;;  %697 = vmatpush.msra.mxu0 %v593_v11  ;;  %924 = vmatpush.msra.mxu2 %v655_v12  ;;  %v660_v9 = vld [vmem:[%s2984_s11 + $0x2e8] sm:$0xff] }
  0xb7   : > { %810 = vmatpush.msra.mxu1 %v625_v13  ;;  %v653_v17 = vld [vmem:[%s2984_s11 + $0x2b0] sm:$0xff]  ;;  %1037 = vmatpush.msra.mxu3 %v687_v14  ;;  %v651_v21 = vld [vmem:[%s2984_s11 + $0x2a0] sm:$0xff]  ;;  %v692_v10 = vld [vmem:[%s2984_s11 + $0x3e8] sm:$0xff] }
  0xb8   : > { %v685_v18 = vld [vmem:[%s2984_s11 + $0x3b0] sm:$0xff]  ;;  %698 = vmatpush.msra.mxu0 %v591_v15  ;;  %v683_v22 = vld [vmem:[%s2984_s11 + $0x3a0] sm:$0xff]  ;;  %925 = vmatpush.msra.mxu2 %v653_v17  ;;  %v596_v11 = vld [vmem:[%s2984_s11 + $0xe8] sm:$0xff] }
  0xb9   : > { %v589_v19 = vld [vmem:[%s2984_s11 + $0xb0] sm:$0xff]  ;;  %811 = vmatpush.msra.mxu1 %v623_v16  ;;  %1038 = vmatpush.msra.mxu3 %v685_v18  ;;  %v587_v23 = vld [vmem:[%s2984_s11 + $0xa0] sm:$0xff]  ;;  %v628_v12 = vld [vmem:[%s2984_s11 + $0x1e8] sm:$0xff] }
  0xba   : > { %v621_v20 = vld [vmem:[%s2984_s11 + $0x1b0] sm:$0xff]  ;;  %v619_v24 = vld [vmem:[%s2984_s11 + $0x1a0] sm:$0xff]  ;;  %699 = vmatpush.msra.mxu0 %v589_v19  ;;  %926 = vmatpush.msra.mxu2 %v651_v21  ;;  %v658_v13 = vld [vmem:[%s2984_s11 + $0x2d8] sm:$0xff] }
  0xbb   : > { %812 = vmatpush.msra.mxu1 %v621_v20  ;;  %v649_v25 = vld [vmem:[%s2984_s11 + $0x290] sm:$0xff]  ;;  %1039 = vmatpush.msra.mxu3 %v683_v22  ;;  %v647_v29 = vld [vmem:[%s2984_s11 + $0x280] sm:$0xff]  ;;  %v690_v14 = vld [vmem:[%s2984_s11 + $0x3d8] sm:$0xff] }
  0xbc   : > { %v681_v26 = vld [vmem:[%s2984_s11 + $0x390] sm:$0xff]  ;;  %700 = vmatpush.msra.mxu0 %v587_v23  ;;  %v679_v30 = vld [vmem:[%s2984_s11 + $0x380] sm:$0xff]  ;;  %927 = vmatpush.msra.mxu2 %v649_v25  ;;  %v446_v16 = vld [vmem:[%s2976_s26 + $0x38] sm:$0xff] }
  0xbd   : > { %v585_v27 = vld [vmem:[%s2984_s11 + $0x90] sm:$0xff]  ;;  %813 = vmatpush.msra.mxu1 %v619_v24  ;;  %1040 = vmatpush.msra.mxu3 %v681_v26  ;;  %v583_v31 = vld [vmem:[%s2984_s11 + $0x80] sm:$0xff]  ;;  %v594_v17 = vld [vmem:[%s2984_s11 + $0xd8] sm:$0xff] }
  0xbe   : > { %v617_v28 = vld [vmem:[%s2984_s11 + $0x190] sm:$0xff]  ;;  %v615_v32 = vld [vmem:[%s2984_s11 + $0x180] sm:$0xff]  ;;  %701 = vmatpush.msra.mxu0 %v585_v27  ;;  %928 = vmatpush.msra.mxu2 %v647_v29  ;;  %v626_v18 = vld [vmem:[%s2984_s11 + $0x1d8] sm:$0xff] }
  0xbf   : > { %814 = vmatpush.msra.mxu1 %v617_v28  ;;  %v645_v33 = vld [vmem:[%s2984_s11 + $0x270] sm:$0xff]  ;;  %1041 = vmatpush.msra.mxu3 %v679_v30  ;;  %v643_v37 = vld [vmem:[%s2984_s11 + $0x260] sm:$0xff]  ;;  %v444_v20 = vld [vmem:[%s2976_s26 + $0x28] sm:$0xff] }
  0xc0   : > { %v677_v34 = vld [vmem:[%s2984_s11 + $0x370] sm:$0xff]  ;;  %702 = vmatpush.msra.mxu0 %v583_v31  ;;  %v675_v38 = vld [vmem:[%s2984_s11 + $0x360] sm:$0xff]  ;;  %929 = vmatpush.msra.mxu2 %v645_v33  ;;  %v450_v22 = vld [vmem:[%s2976_s26 + $0x58] sm:$0xff] }
  0xc1   : > { %v581_v35 = vld [vmem:[%s2984_s11 + $0x70] sm:$0xff]  ;;  %815 = vmatpush.msra.mxu1 %v615_v32  ;;  %1042 = vmatpush.msra.mxu3 %v677_v34  ;;  %v579_v39 = vld [vmem:[%s2984_s11 + $0x60] sm:$0xff]  ;;  %v448_v24 = vld [vmem:[%s2976_s26 + $0x48] sm:$0xff] }
  0xc2   : > { %v613_v36 = vld [vmem:[%s2984_s11 + $0x170] sm:$0xff]  ;;  %v611_v40 = vld [vmem:[%s2984_s11 + $0x160] sm:$0xff]  ;;  %703 = vmatpush.msra.mxu0 %v581_v35  ;;  %930 = vmatpush.msra.mxu2 %v643_v37  ;;  %v656_v25 = vld [vmem:[%s2984_s11 + $0x2c8] sm:$0xff] }
  0xc3   : > { %816 = vmatpush.msra.mxu1 %v613_v36  ;;  %v641_v41 = vld [vmem:[%s2984_s11 + $0x250] sm:$0xff]  ;;  %1043 = vmatpush.msra.mxu3 %v675_v38  ;;  %v639_v45 = vld [vmem:[%s2984_s11 + $0x240] sm:$0xff]  ;;  %v688_v26 = vld [vmem:[%s2984_s11 + $0x3c8] sm:$0xff] }
  0xc4   : > { %v673_v42 = vld [vmem:[%s2984_s11 + $0x350] sm:$0xff]  ;;  %704 = vmatpush.msra.mxu0 %v579_v39  ;;  %v671_v46 = vld [vmem:[%s2984_s11 + $0x340] sm:$0xff]  ;;  %931 = vmatpush.msra.mxu2 %v641_v41  ;;  %v592_v27 = vld [vmem:[%s2984_s11 + $0xc8] sm:$0xff] }
  0xc5   : > { %v577_v43 = vld [vmem:[%s2984_s11 + $0x50] sm:$0xff]  ;;  %817 = vmatpush.msra.mxu1 %v611_v40  ;;  %1044 = vmatpush.msra.mxu3 %v673_v42  ;;  %v575_v47 = vld [vmem:[%s2984_s11 + $0x40] sm:$0xff]  ;;  %v624_v28 = vld [vmem:[%s2984_s11 + $0x1c8] sm:$0xff] }
  0xc6   : > { %v609_v44 = vld [vmem:[%s2984_s11 + $0x150] sm:$0xff]  ;;  %v607_v48 = vld [vmem:[%s2984_s11 + $0x140] sm:$0xff]  ;;  %705 = vmatpush.msra.mxu0 %v577_v43  ;;  %932 = vmatpush.msra.mxu2 %v639_v45  ;;  %v454_v30 = vld [vmem:[%s2976_s26 + $0x78] sm:$0xff] }
  0xc7   : > { %818 = vmatpush.msra.mxu1 %v609_v44  ;;  %v637_v49 = vld [vmem:[%s2984_s11 + $0x230] sm:$0xff]  ;;  %1045 = vmatpush.msra.mxu3 %v671_v46  ;;  %v635_v53 = vld [vmem:[%s2984_s11 + $0x220] sm:$0xff]  ;;  %v452_v32 = vld [vmem:[%s2976_s26 + $0x68] sm:$0xff] }
  0xc8   : > { %v669_v50 = vld [vmem:[%s2984_s11 + $0x330] sm:$0xff]  ;;  %706 = vmatpush.msra.mxu0 %v575_v47  ;;  %v667_v54 = vld [vmem:[%s2984_s11 + $0x320] sm:$0xff]  ;;  %933 = vmatpush.msra.mxu2 %v637_v49  ;;  %v458_v34 = vld [vmem:[%s2976_s26 + $0x98] sm:$0xff] }
  0xc9   : > { %v573_v51 = vld [vmem:[%s2984_s11 + $0x30] sm:$0xff]  ;;  %819 = vmatpush.msra.mxu1 %v607_v48  ;;  %1046 = vmatpush.msra.mxu3 %v669_v50  ;;  %v571_v55 = vld [vmem:[%s2984_s11 + $0x20] sm:$0xff]  ;;  %v456_v36 = vld [vmem:[%s2976_s26 + $0x88] sm:$0xff] }
  0xca   : > { %v605_v52 = vld [vmem:[%s2984_s11 + $0x130] sm:$0xff]  ;;  %v603_v56 = vld [vmem:[%s2984_s11 + $0x120] sm:$0xff]  ;;  %707 = vmatpush.msra.mxu0 %v573_v51  ;;  %934 = vmatpush.msra.mxu2 %v635_v53  ;;  %v654_v37 = vld [vmem:[%s2984_s11 + $0x2b8] sm:$0xff] }
  0xcb   : > { %820 = vmatpush.msra.mxu1 %v605_v52  ;;  %v633_v57 = vld [vmem:[%s2984_s11 + $0x210] sm:$0xff]  ;;  %1047 = vmatpush.msra.mxu3 %v667_v54  ;;  %v631_v61 = vld [vmem:[%s2984_s11 + $0x200] sm:$0xff]  ;;  %v686_v38 = vld [vmem:[%s2984_s11 + $0x3b8] sm:$0xff] }
  0xcc   : > { %v665_v58 = vld [vmem:[%s2984_s11 + $0x310] sm:$0xff]  ;;  %708 = vmatpush.msra.mxu0 %v571_v55  ;;  %v663_v62 = vld [vmem:[%s2984_s11 + $0x300] sm:$0xff]  ;;  %935 = vmatpush.msra.mxu2 %v633_v57  ;;  %v590_v39 = vld [vmem:[%s2984_s11 + $0xb8] sm:$0xff] }
  0xcd   : > { %v569_v59 = vld [vmem:[%s2984_s11 + $0x10] sm:$0xff]  ;;  %821 = vmatpush.msra.mxu1 %v603_v56  ;;  %1048 = vmatpush.msra.mxu3 %v665_v58  ;;  %v567_v3 = vld [vmem:[%s2984_s11] sm:$0xff]  ;;  %v622_v40 = vld [vmem:[%s2984_s11 + $0x1b8] sm:$0xff] }
  0xce   : > { %v601_v60 = vld [vmem:[%s2984_s11 + $0x110] sm:$0xff]  ;;  %709 = vmatpush.msra.mxu0 %v569_v59  ;;  %936 = vmatpush.msra.mxu2 %v631_v61  ;;  %v599_v4 = vld [vmem:[%s2984_s11 + $0x100] sm:$0xff]  ;;  %v462_v42 = vld [vmem:[%s2976_s26 + $0xb8] sm:$0xff] }
  0xcf   : > { %v441_v63 = vld [vmem:[%s2976_s26 + $0x10] sm:$0xff]  ;;  %822 = vmatpush.msra.mxu1 %v601_v60  ;;  %1049 = vmatpush.msra.mxu3 %v663_v62  ;;  %v439_v5 = vld [vmem:[%s2976_s26] sm:$0xff]  ;;  %v460_v44 = vld [vmem:[%s2976_s26 + $0xa8] sm:$0xff] }
  0xd0   : > { %937 = vmatmul.f32.vlgmr.msra.gmra.mxu2 %v441_v63  ;;  %1050 = vmatmul.f32.vlgmr.msra.gmra.mxu3 %v442_v0  ;;  %v445_v15 = vld [vmem:[%s2976_s26 + $0x30] sm:$0xff]  ;;  %v443_v19 = vld [vmem:[%s2976_s26 + $0x20] sm:$0xff]  ;;  %v466_v46 = vld [vmem:[%s2976_s26 + $0xd8] sm:$0xff] }
  0xd1   : > { %1373 = vmatpush.msrb.mxu2 %v662_v1  ;;  %1486 = vmatpush.msrb.mxu3 %v694_v2  ;;  %v449_v21 = vld [vmem:[%s2976_s26 + $0x50] sm:$0xff]  ;;  %v447_v23 = vld [vmem:[%s2976_s26 + $0x40] sm:$0xff]  ;;  %v464_v48 = vld [vmem:[%s2976_s26 + $0xc8] sm:$0xff] }
  0xd2   : > { %710 = vmatpush.msra.mxu0 %v567_v3  ;;  %823 = vmatpush.msra.mxu1 %v599_v4  ;;  %v453_v29 = vld [vmem:[%s2976_s26 + $0x70] sm:$0xff]  ;;  %v451_v31 = vld [vmem:[%s2976_s26 + $0x60] sm:$0xff]  ;;  %v652_v49 = vld [vmem:[%s2984_s11 + $0x2a8] sm:$0xff] }
  0xd3   : > { %711 = vmatmul.f32.vlgmr.msra.gmra.mxu0 %v439_v5  ;;  %824 = vmatmul.f32.vlgmr.msra.gmra.mxu1 %v440_v6  ;;  %v457_v33 = vld [vmem:[%s2976_s26 + $0x90] sm:$0xff]  ;;  %v455_v35 = vld [vmem:[%s2976_s26 + $0x80] sm:$0xff]  ;;  %v684_v50 = vld [vmem:[%s2984_s11 + $0x3a8] sm:$0xff] }
  0xd4   : > { %1147 = vmatpush.msrb.mxu0 %v598_v7  ;;  %1260 = vmatpush.msrb.mxu1 %v630_v8  ;;  %v461_v41 = vld [vmem:[%s2976_s26 + $0xb0] sm:$0xff]  ;;  %v459_v43 = vld [vmem:[%s2976_s26 + $0xa0] sm:$0xff]  ;;  %v588_v51 = vld [vmem:[%s2984_s11 + $0xa8] sm:$0xff] }
  0xd5   : > { %1374 = vmatpush.msrb.mxu2 %v660_v9  ;;  %1487 = vmatpush.msrb.mxu3 %v692_v10  ;;  %v465_v45 = vld [vmem:[%s2976_s26 + $0xd0] sm:$0xff]  ;;  %v463_v47 = vld [vmem:[%s2976_s26 + $0xc0] sm:$0xff]  ;;  %v620_v52 = vld [vmem:[%s2984_s11 + $0x1a8] sm:$0xff] }
  0xd6   : > { %1148 = vmatpush.msrb.mxu0 %v596_v11  ;;  %1261 = vmatpush.msrb.mxu1 %v628_v12  ;;  %v469_v53 = vld [vmem:[%s2976_s26 + $0xf0] sm:$0xff]  ;;  %v470_v54 = vld [vmem:[%s2976_s26 + $0xf8] sm:$0xff]  ;;  %v467_v55 = vld [vmem:[%s2976_s26 + $0xe0] sm:$0xff] }
  0xd7   : > { %1375 = vmatpush.msrb.mxu2 %v658_v13  ;;  %1488 = vmatpush.msrb.mxu3 %v690_v14  ;;  %v468_v56 = vld [vmem:[%s2976_s26 + $0xe8] sm:$0xff]  ;;  %v473_v57 = vld [vmem:[%s2976_s26 + $0x110] sm:$0xff]  ;;  %v474_v58 = vld [vmem:[%s2976_s26 + $0x118] sm:$0xff] }
  0xd8   : > { %940 = vmatmul.f32.gmra.mxu2 %v445_v15  ;;  %1053 = vmatmul.f32.gmra.mxu3 %v446_v16  ;;  %v471_v59 = vld [vmem:[%s2976_s26 + $0x100] sm:$0xff]  ;;  %v472_v60 = vld [vmem:[%s2976_s26 + $0x108] sm:$0xff]  ;;  %v650_v61 = vld [vmem:[%s2984_s11 + $0x298] sm:$0xff] }
  0xd9   : > { %1149 = vmatpush.msrb.mxu0 %v594_v17  ;;  %1262 = vmatpush.msrb.mxu1 %v626_v18  ;;  %v682_v62 = vld [vmem:[%s2984_s11 + $0x398] sm:$0xff]  ;;  %v477_v1 = vld [vmem:[%s2976_s26 + $0x130] sm:$0xff]  ;;  %v475_v3 = vld [vmem:[%s2976_s26 + $0x120] sm:$0xff] }
  0xda   : > { %1376 = vmatpush.msrb.mxu2 %v656_v25  ;;  %1489 = vmatpush.msrb.mxu3 %v688_v26  ;;  %v586_v63 = vld [vmem:[%s2984_s11 + $0x98] sm:$0xff]  ;;  %v476_v4 = vld [vmem:[%s2976_s26 + $0x128] sm:$0xff]  ;;  %v481_v5 = vld [vmem:[%s2976_s26 + $0x150] sm:$0xff] }
  0xdb   : > { %714 = vmatmul.f32.gmra.mxu0 %v443_v19  ;;  %827 = vmatmul.f32.gmra.mxu1 %v444_v20  ;;  %v618_v0 = vld [vmem:[%s2984_s11 + $0x198] sm:$0xff]  ;;  %v479_v7 = vld [vmem:[%s2976_s26 + $0x140] sm:$0xff]  ;;  %v480_v8 = vld [vmem:[%s2976_s26 + $0x148] sm:$0xff] }
  0xdc   : > { %1150 = vmatpush.msrb.mxu0 %v592_v27  ;;  %1263 = vmatpush.msrb.mxu1 %v624_v28  ;;  %v478_v2 = vld [vmem:[%s2976_s26 + $0x138] sm:$0xff]  ;;  %v648_v9 = vld [vmem:[%s2984_s11 + $0x288] sm:$0xff]  ;;  %v485_v13 = vld [vmem:[%s2976_s26 + $0x170] sm:$0xff] }
  0xdd   : > { %1377 = vmatpush.msrb.mxu2 %v654_v37  ;;  %1490 = vmatpush.msrb.mxu3 %v686_v38  ;;  %v482_v6 = vld [vmem:[%s2976_s26 + $0x158] sm:$0xff]  ;;  %v680_v10 = vld [vmem:[%s2984_s11 + $0x388] sm:$0xff]  ;;  %v483_v15 = vld [vmem:[%s2976_s26 + $0x160] sm:$0xff] }
  0xde   : > { %1151 = vmatpush.msrb.mxu0 %v590_v39  ;;  %1264 = vmatpush.msrb.mxu1 %v622_v40  ;;  %v584_v11 = vld [vmem:[%s2984_s11 + $0x88] sm:$0xff]  ;;  %v486_v14 = vld [vmem:[%s2976_s26 + $0x178] sm:$0xff]  ;;  %v489_v17 = vld [vmem:[%s2976_s26 + $0x190] sm:$0xff] }
  0xdf   : > { %1378 = vmatpush.msrb.mxu2 %v652_v49  ;;  %1491 = vmatpush.msrb.mxu3 %v684_v50  ;;  %v616_v12 = vld [vmem:[%s2984_s11 + $0x188] sm:$0xff]  ;;  %v490_v18 = vld [vmem:[%s2976_s26 + $0x198] sm:$0xff]  ;;  %v487_v19 = vld [vmem:[%s2976_s26 + $0x180] sm:$0xff] }
  0xe0   : > { %943 = vmatmul.f32.gmra.mxu2 %v449_v21  ;;  %1056 = vmatmul.f32.gmra.mxu3 %v450_v22  ;;  %v484_v16 = vld [vmem:[%s2976_s26 + $0x168] sm:$0xff]  ;;  %v646_v21 = vld [vmem:[%s2984_s11 + $0x278] sm:$0xff]  ;;  %v493_v25 = vld [vmem:[%s2976_s26 + $0x1b0] sm:$0xff] }
  0xe1   : > { %1152 = vmatpush.msrb.mxu0 %v588_v51  ;;  %1265 = vmatpush.msrb.mxu1 %v620_v52  ;;  %v488_v20 = vld [vmem:[%s2976_s26 + $0x188] sm:$0xff]  ;;  %v678_v22 = vld [vmem:[%s2984_s11 + $0x378] sm:$0xff]  ;;  %v491_v27 = vld [vmem:[%s2976_s26 + $0x1a0] sm:$0xff] }
  0xe2   : > { %1379 = vmatpush.msrb.mxu2 %v650_v61  ;;  %1492 = vmatpush.msrb.mxu3 %v682_v62  ;;  %v494_v26 = vld [vmem:[%s2976_s26 + $0x1b8] sm:$0xff]  ;;  %v492_v28 = vld [vmem:[%s2976_s26 + $0x1a8] sm:$0xff]  ;;  %v501_v37 = vld [vmem:[%s2976_s26 + $0x1f0] sm:$0xff] }
  0xe3   : > { %717 = vmatmul.f32.gmra.mxu0 %v447_v23  ;;  %830 = vmatmul.f32.gmra.mxu1 %v448_v24  ;;  %v582_v23 = vld [vmem:[%s2984_s11 + $0x78] sm:$0xff]  ;;  %v499_v39 = vld [vmem:[%s2976_s26 + $0x1e0] sm:$0xff]  ;;  %v500_v40 = vld [vmem:[%s2976_s26 + $0x1e8] sm:$0xff] }
  0xe4   : > { %1153 = vmatpush.msrb.mxu0 %v586_v63  ;;  %1266 = vmatpush.msrb.mxu1 %v618_v0  ;;  %v614_v24 = vld [vmem:[%s2984_s11 + $0x178] sm:$0xff]  ;;  %v507_v62 = vld [vmem:[%s2976_s26 + $0x220] sm:$0xff]  ;;  %v508_v63 = vld [vmem:[%s2976_s26 + $0x228] sm:$0xff] }
  0xe5   : > { %1380 = vmatpush.msrb.mxu2 %v648_v9  ;;  %1493 = vmatpush.msrb.mxu3 %v680_v10  ;;  %v502_v38 = vld [vmem:[%s2976_s26 + $0x1f8] sm:$0xff] }
  0xe6   : > { %1154 = vmatpush.msrb.mxu0 %v584_v11  ;;  %1267 = vmatpush.msrb.mxu1 %v616_v12  ;;  %v674_v49 = vld [vmem:[%s2984_s11 + $0x358] sm:$0xff]  ;;  %v511_v11 = vld [vmem:[%s2976_s26 + $0x240] sm:$0xff]  ;;  %v512_v12 = vld [vmem:[%s2976_s26 + $0x248] sm:$0xff] }
  0xe7   : > { %1381 = vmatpush.msrb.mxu2 %v646_v21  ;;  %1494 = vmatpush.msrb.mxu3 %v678_v22  ;;  %v379_v21 = vld [vmem:[#allocation2 + $0x50] sm:$0xff] }
  0xe8   : > { %946 = vmatmul.f32.gmra.mxu2 %v453_v29  ;;  %1059 = vmatmul.f32.gmra.mxu3 %v454_v30  ;;  %v497_v29 = vld [vmem:[%s2976_s26 + $0x1d0] sm:$0xff]  ;;  %v498_v30 = vld [vmem:[%s2976_s26 + $0x1d8] sm:$0xff] }
  0xe9   : > { %1155 = vmatpush.msrb.mxu0 %v582_v23  ;;  %1268 = vmatpush.msrb.mxu1 %v614_v24  ;;  %v517_v22 = vld [vmem:[%s2976_s26 + $0x270] sm:$0xff]  ;;  %v518_v23 = vld [vmem:[%s2976_s26 + $0x278] sm:$0xff] }
  0xeb   : > { %720 = vmatmul.f32.gmra.mxu0 %v451_v31  ;;  %833 = vmatmul.f32.gmra.mxu1 %v452_v32  ;;  %v495_v31 = vld [vmem:[%s2976_s26 + $0x1c0] sm:$0xff]  ;;  %v496_v32 = vld [vmem:[%s2976_s26 + $0x1c8] sm:$0xff] }
  0xf0   : > { %949 = vmatmul.f32.gmra.mxu2 %v457_v33  ;;  %1062 = vmatmul.f32.gmra.mxu3 %v458_v34  ;;  %v644_v33 = vld [vmem:[%s2984_s11 + $0x268] sm:$0xff] }
  0xf1   : > { %v676_v34 = vld [vmem:[%s2984_s11 + $0x368] sm:$0xff]  ;;  %1382 = vmatpush.msrb.mxu2 %v644_v33 }
  0xf2   : > { %1495 = vmatpush.msrb.mxu3 %v676_v34  ;;  %v381_v34 = vld [vmem:[#allocation2 + $0x130] sm:$0xff] }
  0xf3   : > { %723 = vmatmul.f32.gmra.mxu0 %v455_v35  ;;  %836 = vmatmul.f32.gmra.mxu1 %v456_v36  ;;  %v580_v35 = vld [vmem:[%s2984_s11 + $0x68] sm:$0xff] }
  0xf4   : > { %v612_v36 = vld [vmem:[%s2984_s11 + $0x168] sm:$0xff]  ;;  %1156 = vmatpush.msrb.mxu0 %v580_v35  ;;  %1496 = vmatpush.msrb.mxu3 %v674_v49  ;;  %v521_v35 = vld [vmem:[%s2976_s26 + $0x290] sm:$0xff]  ;;  %v574_v49 = vld [vmem:[%s2984_s11 + $0x38] sm:$0xff] }
  0xf5   : > { %1269 = vmatpush.msrb.mxu1 %v612_v36  ;;  %v522_v36 = vld [vmem:[%s2976_s26 + $0x298] sm:$0xff] }
  0xf8   : > { %952 = vmatmul.f32.gmra.mxu2 %v461_v41  ;;  %1065 = vmatmul.f32.gmra.mxu3 %v462_v42  ;;  %v505_v41 = vld [vmem:[%s2976_s26 + $0x210] sm:$0xff]  ;;  %v506_v42 = vld [vmem:[%s2976_s26 + $0x218] sm:$0xff] }
  0xfb   : > { %726 = vmatmul.f32.gmra.mxu0 %v459_v43  ;;  %839 = vmatmul.f32.gmra.mxu1 %v460_v44 }
 0x100   : > { %955 = vmatmul.f32.gmra.mxu2 %v465_v45  ;;  %1068 = vmatmul.f32.gmra.mxu3 %v466_v46  ;;  %v503_v45 = vld [vmem:[%s2976_s26 + $0x200] sm:$0xff]  ;;  %v504_v46 = vld [vmem:[%s2976_s26 + $0x208] sm:$0xff] }
 0x103   : > { %729 = vmatmul.f32.gmra.mxu0 %v463_v47  ;;  %842 = vmatmul.f32.gmra.mxu1 %v464_v48  ;;  %v642_v48 = vld [vmem:[%s2984_s11 + $0x258] sm:$0xff] }
 0x104   : > { %1383 = vmatpush.msrb.mxu2 %v642_v48 }
 0x108   : > { %958 = vmatmul.f32.gmra.mxu2 %v469_v53  ;;  %1071 = vmatmul.f32.gmra.mxu3 %v470_v54  ;;  %v578_v53 = vld [vmem:[%s2984_s11 + $0x58] sm:$0xff] }
 0x109   : > { %v610_v54 = vld [vmem:[%s2984_s11 + $0x158] sm:$0xff]  ;;  %1157 = vmatpush.msrb.mxu0 %v578_v53 }
 0x10a   : > { %1270 = vmatpush.msrb.mxu1 %v610_v54  ;;  %v526_v53 = vld [vmem:[%s2976_s26 + $0x2b8] sm:$0xff] }
 0x10b   : > { %732 = vmatmul.f32.gmra.mxu0 %v467_v55  ;;  %845 = vmatmul.f32.gmra.mxu1 %v468_v56  ;;  %v375_v55 = vld [vmem:[#allocation2 + $0xb0] sm:$0xff] }
 0x10c   : > { %v509_v56 = vld [vmem:[%s2976_s26 + $0x230] sm:$0xff] }
 0x110   : > { %961 = vmatmul.f32.gmra.mxu2 %v473_v57  ;;  %1074 = vmatmul.f32.gmra.mxu3 %v474_v58  ;;  %v510_v57 = vld [vmem:[%s2976_s26 + $0x238] sm:$0xff] }
 0x113   : > { %735 = vmatmul.f32.gmra.mxu0 %v471_v59  ;;  %848 = vmatmul.f32.gmra.mxu1 %v472_v60 }
 0x118   : > { %964 = vmatmul.f32.gmra.mxu2 %v477_v1  ;;  %1077 = vmatmul.f32.gmra.mxu3 %v478_v2 }
 0x11b   : > { %738 = vmatmul.f32.gmra.mxu0 %v475_v3  ;;  %851 = vmatmul.f32.gmra.mxu1 %v476_v4  ;;  %v377_v4 = vld [vmem:[#allocation2 + $0xd8] sm:$0xff] }
 0x120   : > { %967 = vmatmul.f32.gmra.mxu2 %v481_v5  ;;  %1080 = vmatmul.f32.gmra.mxu3 %v482_v6  ;;  %v513_v5 = vld [vmem:[%s2976_s26 + $0x250] sm:$0xff]  ;;  %v514_v6 = vld [vmem:[%s2976_s26 + $0x258] sm:$0xff] }
 0x123   : > { %741 = vmatmul.f32.gmra.mxu0 %v479_v7  ;;  %854 = vmatmul.f32.gmra.mxu1 %v480_v8 }
 0x128   : > { %970 = vmatmul.f32.gmra.mxu2 %v485_v13  ;;  %1083 = vmatmul.f32.gmra.mxu3 %v486_v14  ;;  %v640_v14 = vld [vmem:[%s2984_s11 + $0x248] sm:$0xff] }
 0x129   : > { %1384 = vmatpush.msrb.mxu2 %v640_v14 }
 0x12b   : > { %744 = vmatmul.f32.gmra.mxu0 %v483_v15  ;;  %857 = vmatmul.f32.gmra.mxu1 %v484_v16  ;;  %v672_v15 = vld [vmem:[%s2984_s11 + $0x348] sm:$0xff] }
 0x12c   : > { %1497 = vmatpush.msrb.mxu3 %v672_v15  ;;  %v572_v15 = vld [vmem:[%s2984_s11 + $0x28] sm:$0xff] }
 0x130   : > { %973 = vmatmul.f32.gmra.mxu2 %v489_v17  ;;  %1086 = vmatmul.f32.gmra.mxu3 %v490_v18 }
 0x133   : > { %747 = vmatmul.f32.gmra.mxu0 %v487_v19  ;;  %860 = vmatmul.f32.gmra.mxu1 %v488_v20  ;;  %v576_v19 = vld [vmem:[%s2984_s11 + $0x48] sm:$0xff] }
 0x134   : > { %v608_v20 = vld [vmem:[%s2984_s11 + $0x148] sm:$0xff]  ;;  %1158 = vmatpush.msrb.mxu0 %v576_v19  ;;  %v3284_v19 = vld [vmem:[%s2976_s26 + $0x2f8] sm:$0xff] }
 0x135   : > { %1271 = vmatpush.msrb.mxu1 %v608_v20 }
 0x136   : > { %1159 = vmatpush.msrb.mxu0 %v574_v49  ;;  %v3320_v49 = vld [vmem:[%s2976_s26 + $0x338] sm:$0xff] }
 0x138   : > { %976 = vmatmul.f32.gmra.mxu2 %v493_v25  ;;  %1089 = vmatmul.f32.gmra.mxu3 %v494_v26 }
 0x139   : > { %1160 = vmatpush.msrb.mxu0 %v572_v15  ;;  %v3356_v15 = vld [vmem:[%s2976_s26 + $0x378] sm:$0xff] }
 0x13b   : > { %750 = vmatmul.f32.gmra.mxu0 %v491_v27  ;;  %863 = vmatmul.f32.gmra.mxu1 %v492_v28  ;;  %v515_v28 = vld [vmem:[%s2976_s26 + $0x260] sm:$0xff] }
 0x140   : > { %979 = vmatmul.f32.gmra.mxu2 %v497_v29  ;;  %1092 = vmatmul.f32.gmra.mxu3 %v498_v30  ;;  %v516_v29 = vld [vmem:[%s2976_s26 + $0x268] sm:$0xff] }
 0x143   : > { %753 = vmatmul.f32.gmra.mxu0 %v495_v31  ;;  %866 = vmatmul.f32.gmra.mxu1 %v496_v32 }
 0x148   : > { %982 = vmatmul.f32.gmra.mxu2 %v501_v37  ;;  %1095 = vmatmul.f32.gmra.mxu3 %v502_v38 }
 0x14b   : > { %756 = vmatmul.f32.gmra.mxu0 %v499_v39  ;;  %869 = vmatmul.f32.gmra.mxu1 %v500_v40 }
 0x150   : > { %985 = vmatmul.f32.gmra.mxu2 %v505_v41  ;;  %v712_v43 = vpop.f32.mrf.mxu0  ;;  %v825_v44 = vpop.f32.mrf.mxu1  ;;  %1098 = vmatmul.f32.gmra.mxu3 %v506_v42  ;;  %v519_v41 = vld [vmem:[%s2976_s26 + $0x280] sm:$0xff]  ;;  %v520_v42 = vld [vmem:[%s2976_s26 + $0x288] sm:$0xff] }
 0x151   : > { %v826_v47 = vadd.f32 %v825_v44, %v712_v43  ;;  %v638_v44 = vld [vmem:[%s2984_s11 + $0x238] sm:$0xff] }
 0x152   : > { %1385 = vmatpush.msrb.mxu2 %v638_v44 }
 0x153   : > { %v938_v50 = vpop.f32.mrf.mxu2  ;;  %759 = vmatmul.f32.gmra.mxu0 %v503_v45  ;;  %872 = vmatmul.f32.gmra.mxu1 %v504_v46  ;;  %v1051_v51 = vpop.f32.mrf.mxu3  ;;  %v670_v45 = vld [vmem:[%s2984_s11 + $0x338] sm:$0xff] }
 0x154   : > { %v939_v52 = vadd.f32 %v938_v50, %v826_v47  ;;  %1498 = vmatpush.msrb.mxu3 %v670_v45  ;;  %v606_v50 = vld [vmem:[%s2984_s11 + $0x138] sm:$0xff] }
 0x155   : > { %1272 = vmatpush.msrb.mxu1 %v606_v50  ;;  %v570_v45 = vld [vmem:[%s2984_s11 + $0x18] sm:$0xff] }
 0x156   : > { %v1052_v58 = vadd.f32 %v1051_v51, %v939_v52  ;;  %v383_v51 = vld [vmem:[#allocation2 + $0x180] sm:$0xff]  ;;  %v525_v52 = vld [vmem:[%s2976_s26 + $0x2b0] sm:$0xff]  ;;  %1161 = vmatpush.msrb.mxu0 %v570_v45 }
 0x158   : > { %v1599_v59 = vadd.f32 %v1052_v58, %v375_v55  ;;  %988 = vmatmul.f32.gmra.mxu2 %v509_v56  ;;  %v715_v60 = vpop.f32.mrf.mxu0  ;;  %v828_v61 = vpop.f32.mrf.mxu1  ;;  %1101 = vmatmul.f32.gmra.mxu3 %v510_v57  ;;  %v523_v58 = vld [vmem:[%s2976_s26 + $0x2a0] sm:$0xff] }
 0x159   : > { %v829_v0 = vadd.f32 %v828_v61, %v715_v60 }
 0x15a   : > { %1663 = vst [vmem:[#allocation2 + $0xb0] sm:$0xff] %v1599_v59  ;;  %v524_v59 = vld [vmem:[%s2976_s26 + $0x2a8] sm:$0xff] }
 0x15b   : > { %v941_v1 = vpop.f32.mrf.mxu2  ;;  %762 = vmatmul.f32.gmra.mxu0 %v507_v62  ;;  %875 = vmatmul.f32.gmra.mxu1 %v508_v63  ;;  %v1054_v2 = vpop.f32.mrf.mxu3 }
 0x15c   : > { %v942_v3 = vadd.f32 %v941_v1, %v829_v0  ;;  %v385_v0 = vld [vmem:[#allocation2 + $0x118] sm:$0xff]  ;;  %v529_v1 = vld [vmem:[%s2976_s26 + $0x2d0] sm:$0xff] }
 0x15e   : > { %v1055_v7 = vadd.f32 %v1054_v2, %v942_v3  ;;  %v530_v2 = vld [vmem:[%s2976_s26 + $0x2d8] sm:$0xff] }
 0x160   : > { %v1601_v8 = vadd.f32 %v1055_v7, %v377_v4  ;;  %991 = vmatmul.f32.gmra.mxu2 %v513_v5  ;;  %v718_v9 = vpop.f32.mrf.mxu0  ;;  %v831_v10 = vpop.f32.mrf.mxu1  ;;  %1104 = vmatmul.f32.gmra.mxu3 %v514_v6  ;;  %v527_v7 = vld [vmem:[%s2976_s26 + $0x2c0] sm:$0xff] }
 0x161   : > { %v832_v13 = vadd.f32 %v831_v10, %v718_v9  ;;  %v636_v10 = vld [vmem:[%s2984_s11 + $0x228] sm:$0xff] }
 0x162   : > { %1665 = vst [vmem:[#allocation2 + $0xd8] sm:$0xff] %v1601_v8  ;;  %v528_v8 = vld [vmem:[%s2976_s26 + $0x2c8] sm:$0xff]  ;;  %1386 = vmatpush.msrb.mxu2 %v636_v10 }
 0x163   : > { %v944_v16 = vpop.f32.mrf.mxu2  ;;  %765 = vmatmul.f32.gmra.mxu0 %v511_v11  ;;  %878 = vmatmul.f32.gmra.mxu1 %v512_v12  ;;  %v1057_v17 = vpop.f32.mrf.mxu3  ;;  %v668_v11 = vld [vmem:[%s2984_s11 + $0x328] sm:$0xff] }
 0x164   : > { %v945_v18 = vadd.f32 %v944_v16, %v832_v13  ;;  %1499 = vmatpush.msrb.mxu3 %v668_v11  ;;  %v604_v16 = vld [vmem:[%s2984_s11 + $0x128] sm:$0xff] }
 0x165   : > { %1273 = vmatpush.msrb.mxu1 %v604_v16  ;;  %v568_v11 = vld [vmem:[%s2984_s11 + $0x8] sm:$0xff] }
 0x166   : > { %v1058_v24 = vadd.f32 %v1057_v17, %v945_v18  ;;  %v387_v17 = vld [vmem:[#allocation2 + $0x120] sm:$0xff]  ;;  %v3281_v18 = vld [vmem:[%s2976_s26 + $0x2f0] sm:$0xff]  ;;  %1162 = vmatpush.msrb.mxu0 %v568_v11 }
 0x167   : > { %v3409_v11 = vld [vmem:[%s2976_s26 + $0x3c0] sm:$0xff] }
 0x168   : > { %v1603_v25 = vadd.f32 %v1058_v24, %v379_v21  ;;  %994 = vmatmul.f32.gmra.mxu2 %v517_v22  ;;  %v721_v26 = vpop.f32.mrf.mxu0  ;;  %v834_v27 = vpop.f32.mrf.mxu1  ;;  %1107 = vmatmul.f32.gmra.mxu3 %v518_v23  ;;  %v3289_v24 = vld [vmem:[%s2976_s26 + $0x2e0] sm:$0xff] }
 0x169   : > { %v835_v30 = vadd.f32 %v834_v27, %v721_v26 }
 0x16a   : > { %1667 = vst [vmem:[#allocation2 + $0x50] sm:$0xff] %v1603_v25  ;;  %v3292_v25 = vld [vmem:[%s2976_s26 + $0x2e8] sm:$0xff] }
 0x16b   : > { %v947_v31 = vpop.f32.mrf.mxu2  ;;  %768 = vmatmul.f32.gmra.mxu0 %v515_v28  ;;  %881 = vmatmul.f32.gmra.mxu1 %v516_v29  ;;  %v1060_v32 = vpop.f32.mrf.mxu3 }
 0x16c   : > { %v948_v33 = vadd.f32 %v947_v31, %v835_v30  ;;  %v389_v30 = vld [vmem:[#allocation2 + $0x108] sm:$0xff]  ;;  %v3297_v31 = vld [vmem:[%s2976_s26 + $0x310] sm:$0xff] }
 0x16e   : > { %v1061_v37 = vadd.f32 %v1060_v32, %v948_v33  ;;  %v3300_v32 = vld [vmem:[%s2976_s26 + $0x318] sm:$0xff] }
 0x170   : > { %v1605_v38 = vadd.f32 %v1061_v37, %v381_v34  ;;  %997 = vmatmul.f32.gmra.mxu2 %v521_v35  ;;  %v724_v39 = vpop.f32.mrf.mxu0  ;;  %v837_v40 = vpop.f32.mrf.mxu1  ;;  %1110 = vmatmul.f32.gmra.mxu3 %v522_v36  ;;  %v3305_v37 = vld [vmem:[%s2976_s26 + $0x300] sm:$0xff] }
 0x171   : > { %v838_v43 = vadd.f32 %v837_v40, %v724_v39  ;;  %v634_v40 = vld [vmem:[%s2984_s11 + $0x218] sm:$0xff] }
 0x172   : > { %1669 = vst [vmem:[#allocation2 + $0x130] sm:$0xff] %v1605_v38  ;;  %v3308_v38 = vld [vmem:[%s2976_s26 + $0x308] sm:$0xff]  ;;  %1387 = vmatpush.msrb.mxu2 %v634_v40 }
 0x173   : > { %v950_v46 = vpop.f32.mrf.mxu2  ;;  %771 = vmatmul.f32.gmra.mxu0 %v519_v41  ;;  %884 = vmatmul.f32.gmra.mxu1 %v520_v42  ;;  %v1063_v47 = vpop.f32.mrf.mxu3  ;;  %v666_v41 = vld [vmem:[%s2984_s11 + $0x318] sm:$0xff] }
 0x174   : > { %v951_v48 = vadd.f32 %v950_v46, %v838_v43  ;;  %1500 = vmatpush.msrb.mxu3 %v666_v41  ;;  %v602_v46 = vld [vmem:[%s2984_s11 + $0x118] sm:$0xff]  ;;  %v3377_v41 = vld [vmem:[%s2976_s26 + $0x380] sm:$0xff] }
 0x175   : > { %1274 = vmatpush.msrb.mxu1 %v602_v46 }
 0x176   : > { %v1064_v54 = vadd.f32 %v1063_v47, %v951_v48  ;;  %v391_v47 = vld [vmem:[#allocation2 + $0xe0] sm:$0xff]  ;;  %v3317_v48 = vld [vmem:[%s2976_s26 + $0x330] sm:$0xff] }
 0x178   : > { %v1607_v55 = vadd.f32 %v1064_v54, %v383_v51  ;;  %1000 = vmatmul.f32.gmra.mxu2 %v525_v52  ;;  %v727_v56 = vpop.f32.mrf.mxu0  ;;  %v840_v57 = vpop.f32.mrf.mxu1  ;;  %1113 = vmatmul.f32.gmra.mxu3 %v526_v53  ;;  %v3325_v54 = vld [vmem:[%s2976_s26 + $0x320] sm:$0xff] }
 0x179   : > { %v841_v60 = vadd.f32 %v840_v57, %v727_v56 }
 0x17a   : > { %1671 = vst [vmem:[#allocation2 + $0x180] sm:$0xff] %v1607_v55  ;;  %v3328_v55 = vld [vmem:[%s2976_s26 + $0x328] sm:$0xff] }
 0x17b   : > { %v953_v61 = vpop.f32.mrf.mxu2  ;;  %774 = vmatmul.f32.gmra.mxu0 %v523_v58  ;;  %887 = vmatmul.f32.gmra.mxu1 %v524_v59  ;;  %v1066_v62 = vpop.f32.mrf.mxu3 }
 0x17c   : > { %v954_v63 = vadd.f32 %v953_v61, %v841_v60  ;;  %v393_v60 = vld [vmem:[#allocation2 + $0x138] sm:$0xff]  ;;  %v3333_v61 = vld [vmem:[%s2976_s26 + $0x350] sm:$0xff] }
 0x17e   : > { %v1067_v3 = vadd.f32 %v1066_v62, %v954_v63  ;;  %v3336_v62 = vld [vmem:[%s2976_s26 + $0x358] sm:$0xff] }
 0x180   : > { %v1609_v4 = vadd.f32 %v1067_v3, %v385_v0  ;;  %1003 = vmatmul.f32.gmra.mxu2 %v529_v1  ;;  %v730_v5 = vpop.f32.mrf.mxu0  ;;  %v843_v6 = vpop.f32.mrf.mxu1  ;;  %1116 = vmatmul.f32.gmra.mxu3 %v530_v2  ;;  %v3341_v3 = vld [vmem:[%s2976_s26 + $0x340] sm:$0xff] }
 0x181   : > { %v844_v9 = vadd.f32 %v843_v6, %v730_v5  ;;  %v632_v6 = vld [vmem:[%s2984_s11 + $0x208] sm:$0xff] }
 0x182   : > { %1673 = vst [vmem:[#allocation2 + $0x118] sm:$0xff] %v1609_v4  ;;  %v3344_v4 = vld [vmem:[%s2976_s26 + $0x348] sm:$0xff]  ;;  %1388 = vmatpush.msrb.mxu2 %v632_v6  ;;  %v3404_v6 = vld [vmem:[%s2976_s26 + $0x3d8] sm:$0xff] }
 0x183   : > { %v956_v12 = vpop.f32.mrf.mxu2  ;;  %777 = vmatmul.f32.gmra.mxu0 %v527_v7  ;;  %890 = vmatmul.f32.gmra.mxu1 %v528_v8  ;;  %v1069_v13 = vpop.f32.mrf.mxu3  ;;  %v664_v7 = vld [vmem:[%s2984_s11 + $0x308] sm:$0xff] }
 0x184   : > { %v957_v14 = vadd.f32 %v956_v12, %v844_v9  ;;  %1501 = vmatpush.msrb.mxu3 %v664_v7  ;;  %v600_v12 = vld [vmem:[%s2984_s11 + $0x108] sm:$0xff] }
 0x185   : > { %1275 = vmatpush.msrb.mxu1 %v600_v12  ;;  %v3412_v12 = vld [vmem:[%s2976_s26 + $0x3c8] sm:$0xff] }
 0x186   : > { %v1070_v20 = vadd.f32 %v1069_v13, %v957_v14  ;;  %v395_v13 = vld [vmem:[#allocation2 + $0x80] sm:$0xff]  ;;  %v3353_v14 = vld [vmem:[%s2976_s26 + $0x370] sm:$0xff] }
 0x188   : > { %v1611_v21 = vadd.f32 %v1070_v20, %v387_v17  ;;  %1006 = vmatmul.f32.gmra.mxu2 %v3281_v18  ;;  %v733_v22 = vpop.f32.mrf.mxu0  ;;  %v846_v23 = vpop.f32.mrf.mxu1  ;;  %1119 = vmatmul.f32.gmra.mxu3 %v3284_v19 }
 0x189   : > { %v847_v26 = vadd.f32 %v846_v23, %v733_v22  ;;  %v3361_v22 = vld [vmem:[%s2976_s26 + $0x360] sm:$0xff]  ;;  %v3364_v23 = vld [vmem:[%s2976_s26 + $0x368] sm:$0xff] }
 0x18a   : > { %1675 = vst [vmem:[#allocation2 + $0x120] sm:$0xff] %v1611_v21 }
 0x18b   : > { %v959_v27 = vpop.f32.mrf.mxu2  ;;  %780 = vmatmul.f32.gmra.mxu0 %v3289_v24  ;;  %893 = vmatmul.f32.gmra.mxu1 %v3292_v25  ;;  %v1072_v28 = vpop.f32.mrf.mxu3 }
 0x18c   : > { %v960_v29 = vadd.f32 %v959_v27, %v847_v26 }
 0x18e   : > { %v1073_v33 = vadd.f32 %v1072_v28, %v960_v29 }
 0x190   : > { %v1613_v34 = vadd.f32 %v1073_v33, %v389_v30  ;;  %1009 = vmatmul.f32.gmra.mxu2 %v3297_v31  ;;  %v736_v35 = vpop.f32.mrf.mxu0  ;;  %v849_v36 = vpop.f32.mrf.mxu1  ;;  %1122 = vmatmul.f32.gmra.mxu3 %v3300_v32  ;;  %v397_v30 = vld [vmem:[#allocation2 + $0x1b8] sm:$0xff]  ;;  %v3369_v33 = vld [vmem:[%s2976_s26 + $0x390] sm:$0xff] }
 0x191   : > { %v850_v39 = vadd.f32 %v849_v36, %v736_v35 }
 0x192   : > { %1677 = vst [vmem:[#allocation2 + $0x108] sm:$0xff] %v1613_v34  ;;  %v3372_v34 = vld [vmem:[%s2976_s26 + $0x398] sm:$0xff] }
 0x193   : > { %v962_v42 = vpop.f32.mrf.mxu2  ;;  %783 = vmatmul.f32.gmra.mxu0 %v3305_v37  ;;  %896 = vmatmul.f32.gmra.mxu1 %v3308_v38  ;;  %v1075_v43 = vpop.f32.mrf.mxu3 }
 0x194   : > { %v963_v44 = vadd.f32 %v962_v42, %v850_v39  ;;  %v3380_v42 = vld [vmem:[%s2976_s26 + $0x388] sm:$0xff] }
 0x196   : > { %v1076_v50 = vadd.f32 %v1075_v43, %v963_v44 }
 0x198   : > { %v1615_v51 = vadd.f32 %v1076_v50, %v391_v47  ;;  %1012 = vmatmul.f32.gmra.mxu2 %v3317_v48  ;;  %v739_v52 = vpop.f32.mrf.mxu0  ;;  %v852_v53 = vpop.f32.mrf.mxu1  ;;  %1125 = vmatmul.f32.gmra.mxu3 %v3320_v49  ;;  %v399_v47 = vld [vmem:[#allocation2 + $0x1e8] sm:$0xff]  ;;  %v3385_v50 = vld [vmem:[%s2976_s26 + $0x3b0] sm:$0xff] }
 0x199   : > { %v853_v56 = vadd.f32 %v852_v53, %v739_v52 }
 0x19a   : > { %1679 = vst [vmem:[#allocation2 + $0xe0] sm:$0xff] %v1615_v51  ;;  %v3388_v51 = vld [vmem:[%s2976_s26 + $0x3b8] sm:$0xff] }
 0x19b   : > { %v965_v57 = vpop.f32.mrf.mxu2  ;;  %786 = vmatmul.f32.gmra.mxu0 %v3325_v54  ;;  %899 = vmatmul.f32.gmra.mxu1 %v3328_v55  ;;  %v1078_v58 = vpop.f32.mrf.mxu3 }
 0x19c   : > { %v966_v59 = vadd.f32 %v965_v57, %v853_v56 }
 0x19e   : > { %v1079_v63 = vadd.f32 %v1078_v58, %v966_v59  ;;  %v3393_v58 = vld [vmem:[%s2976_s26 + $0x3a0] sm:$0xff]  ;;  %v3396_v59 = vld [vmem:[%s2976_s26 + $0x3a8] sm:$0xff] }
 0x1a0   : > { %v1617_v0 = vadd.f32 %v1079_v63, %v393_v60  ;;  %1015 = vmatmul.f32.gmra.mxu2 %v3333_v61  ;;  %v742_v1 = vpop.f32.mrf.mxu0  ;;  %v855_v2 = vpop.f32.mrf.mxu1  ;;  %1128 = vmatmul.f32.gmra.mxu3 %v3336_v62 }
 0x1a1   : > { %v856_v5 = vadd.f32 %v855_v2, %v742_v1  ;;  %v401_v2 = vld [vmem:[#allocation2 + $0x160] sm:$0xff] }
 0x1a2   : > { %1681 = vst [vmem:[#allocation2 + $0x138] sm:$0xff] %v1617_v0 }
 0x1a3   : > { %v968_v8 = vpop.f32.mrf.mxu2  ;;  %789 = vmatmul.f32.gmra.mxu0 %v3341_v3  ;;  %902 = vmatmul.f32.gmra.mxu1 %v3344_v4  ;;  %v1081_v9 = vpop.f32.mrf.mxu3 }
 0x1a4   : > { %v969_v10 = vadd.f32 %v968_v8, %v856_v5  ;;  %v3401_v5 = vld [vmem:[%s2976_s26 + $0x3d0] sm:$0xff] }
 0x1a6   : > { %v1082_v16 = vadd.f32 %v1081_v9, %v969_v10 }
 0x1a8   : > { %v1619_v17 = vadd.f32 %v1082_v16, %v395_v13  ;;  %1018 = vmatmul.f32.gmra.mxu2 %v3353_v14  ;;  %v745_v20 = vpop.f32.mrf.mxu0  ;;  %v858_v21 = vpop.f32.mrf.mxu1  ;;  %1131 = vmatmul.f32.gmra.mxu3 %v3356_v15 }
 0x1a9   : > { %v859_v26 = vadd.f32 %v858_v21, %v745_v20  ;;  %v403_v21 = vld [vmem:[#allocation2 + $0x1e0] sm:$0xff] }
 0x1aa   : > { %1683 = vst [vmem:[#allocation2 + $0x80] sm:$0xff] %v1619_v17 }
 0x1ab   : > { %v971_v27 = vpop.f32.mrf.mxu2  ;;  %792 = vmatmul.f32.gmra.mxu0 %v3361_v22  ;;  %905 = vmatmul.f32.gmra.mxu1 %v3364_v23  ;;  %v1084_v28 = vpop.f32.mrf.mxu3 }
 0x1ac   : > { %v972_v29 = vadd.f32 %v971_v27, %v859_v26  ;;  %v3417_v26 = vld [vmem:[%s2976_s26 + $0x3f0] sm:$0xff]  ;;  %v3420_v27 = vld [vmem:[%s2976_s26 + $0x3f8] sm:$0xff] }
 0x1ae   : > { %v1085_v35 = vadd.f32 %v1084_v28, %v972_v29 }
 0x1b0   : > { %v1621_v36 = vadd.f32 %v1085_v35, %v397_v30  ;;  %1021 = vmatmul.f32.gmra.mxu2 %v3369_v33  ;;  %v748_v39 = vpop.f32.mrf.mxu0  ;;  %v861_v40 = vpop.f32.mrf.mxu1  ;;  %1134 = vmatmul.f32.gmra.mxu3 %v3372_v34 }
 0x1b1   : > { %v862_v43 = vadd.f32 %v861_v40, %v748_v39  ;;  %v3428_v39 = vld [vmem:[%s2976_s26 + $0x3e8] sm:$0xff] }
 0x1b2   : > { %1685 = vst [vmem:[#allocation2 + $0x1b8] sm:$0xff] %v1621_v36  ;;  %v3425_v36 = vld [vmem:[%s2976_s26 + $0x3e0] sm:$0xff] }
 0x1b3   : > { %v974_v44 = vpop.f32.mrf.mxu2  ;;  %795 = vmatmul.f32.gmra.mxu0 %v3377_v41  ;;  %908 = vmatmul.f32.gmra.mxu1 %v3380_v42  ;;  %v1087_v45 = vpop.f32.mrf.mxu3 }
 0x1b4   : > { %v975_v46 = vadd.f32 %v974_v44, %v862_v43 }
 0x1b6   : > { %v1088_v52 = vadd.f32 %v1087_v45, %v975_v46  ;;  %v405_v46 = vld [vmem:[#allocation2 + $0xf0] sm:$0xff] }
 0x1b8   : > { %v1623_v53 = vadd.f32 %v1088_v52, %v399_v47  ;;  %1024 = vmatmul.f32.gmra.mxu2 %v3385_v50  ;;  %v751_v56 = vpop.f32.mrf.mxu0  ;;  %v864_v57 = vpop.f32.mrf.mxu1  ;;  %1137 = vmatmul.f32.gmra.mxu3 %v3388_v51 }
 0x1b9   : > { %v865_v60 = vadd.f32 %v864_v57, %v751_v56 }
 0x1ba   : > { %1687 = vst [vmem:[#allocation2 + $0x1e8] sm:$0xff] %v1623_v53  ;;  %v2308_v53 = vld [vmem:[%s2976_s26 + $0x10] sm:$0xff] }
 0x1bb   : > { %v977_v63 = vpop.f32.mrf.mxu2  ;;  %798 = vmatmul.f32.gmra.mxu0 %v3393_v58  ;;  %911 = vmatmul.f32.gmra.mxu1 %v3396_v59  ;;  %v1090_v0 = vpop.f32.mrf.mxu3 }
 0x1bc   : > { %v978_v1 = vadd.f32 %v977_v63, %v865_v60  ;;  %v2309_v60 = vld [vmem:[%s2976_s26 + $0x18] sm:$0xff] }
 0x1be   : > { %v1091_v7 = vadd.f32 %v1090_v0, %v978_v1  ;;  %v2310_v1 = vld [vmem:[%s2976_s26] sm:$0xff] }
 0x1c0   : > { %v1625_v8 = vadd.f32 %v1091_v7, %v401_v2  ;;  %1027 = vmatmul.f32.gmra.mxu2 %v3401_v5  ;;  %v754_v9 = vpop.f32.mrf.mxu0  ;;  %v867_v10 = vpop.f32.mrf.mxu1  ;;  %1140 = vmatmul.f32.gmra.mxu3 %v3404_v6  ;;  %v2311_v2 = vld [vmem:[%s2976_s26 + $0x8] sm:$0xff] }
 0x1c1   : > { %v868_v13 = vadd.f32 %v867_v10, %v754_v9  ;;  %v407_v9 = vld [vmem:[#allocation2 + $0x148] sm:$0xff] }
 0x1c2   : > { %1689 = vst [vmem:[#allocation2 + $0x160] sm:$0xff] %v1625_v8 }
 0x1c3   : > { %v980_v16 = vpop.f32.mrf.mxu2  ;;  %801 = vmatmul.f32.gmra.mxu0 %v3409_v11  ;;  %914 = vmatmul.f32.gmra.mxu1 %v3412_v12  ;;  %v1093_v17 = vpop.f32.mrf.mxu3 }
 0x1c4   : > { %v981_v20 = vadd.f32 %v980_v16, %v868_v13  ;;  %v2312_v16 = vld [vmem:[%s2976_s26 + $0x30] sm:$0xff] }
 0x1c6   : > { %v1094_v28 = vadd.f32 %v1093_v17, %v981_v20 }
 0x1c8   : > { %v1627_v29 = vadd.f32 %v1094_v28, %v403_v21  ;;  %1030 = vmatmul.f32.gmra.mxu2 %v3417_v26  ;;  %v757_v30 = vpop.f32.mrf.mxu0  ;;  %v870_v35 = vpop.f32.mrf.mxu1  ;;  %1143 = vmatmul.f32.gmra.mxu3 %v3420_v27  ;;  %v2313_v21 = vld [vmem:[%s2976_s26 + $0x38] sm:$0xff] }
 0x1c9   : > { %v871_v40 = vadd.f32 %v870_v35, %v757_v30  ;;  %v2314_v30 = vld [vmem:[%s2976_s26 + $0x20] sm:$0xff]  ;;  %v2315_v35 = vld [vmem:[%s2976_s26 + $0x28] sm:$0xff] }
 0x1ca   : > { %1691 = vst [vmem:[#allocation2 + $0x1e0] sm:$0xff] %v1627_v29 }
 0x1cb   : > { %v983_v43 = vpop.f32.mrf.mxu2  ;;  %804 = vmatmul.f32.gmra.mxu0 %v3425_v36  ;;  %917 = vmatmul.f32.gmra.mxu1 %v3428_v39  ;;  %v1096_v44 = vpop.f32.mrf.mxu3 }
 0x1cc   : > { %v984_v45 = vadd.f32 %v983_v43, %v871_v40 }
 0x1ce   : > { %v1097_v47 = vadd.f32 %v1096_v44, %v984_v45  ;;  %v409_v44 = vld [vmem:[#allocation2 + $0x100] sm:$0xff] }
 0x1d0   : > { %v1629_v52 = vadd.f32 %v1097_v47, %v405_v46  ;;  %1389 = vmatmul.f32.vlgmr.msrb.gmra.mxu2 %v2308_v53  ;;  %v760_v56 = vpop.f32.mrf.mxu0  ;;  %v873_v57 = vpop.f32.mrf.mxu1  ;;  %1502 = vmatmul.f32.vlgmr.msrb.gmra.mxu3 %v2309_v60  ;;  %v2316_v47 = vld [vmem:[%s2976_s26 + $0x50] sm:$0xff] }
 0x1d1   : > { %v874_v63 = vadd.f32 %v873_v57, %v760_v56  ;;  %v2317_v56 = vld [vmem:[%s2976_s26 + $0x58] sm:$0xff] }
 0x1d2   : > { %1693 = vst [vmem:[#allocation2 + $0xf0] sm:$0xff] %v1629_v52 }
 0x1d3   : > { %v986_v0 = vpop.f32.mrf.mxu2  ;;  %1163 = vmatmul.f32.vlgmr.msrb.gmra.mxu0 %v2310_v1  ;;  %1276 = vmatmul.f32.vlgmr.msrb.gmra.mxu1 %v2311_v2  ;;  %v1099_v7 = vpop.f32.mrf.mxu3 }
 0x1d4   : > { %v987_v8 = vadd.f32 %v986_v0, %v874_v63  ;;  %v2318_v63 = vld [vmem:[%s2976_s26 + $0x40] sm:$0xff]  ;;  %v2319_v0 = vld [vmem:[%s2976_s26 + $0x48] sm:$0xff] }
 0x1d6   : > { %v1100_v10 = vadd.f32 %v1099_v7, %v987_v8  ;;  %v411_v7 = vld [vmem:[#allocation2 + $0x40] sm:$0xff] }
 0x1d8   : > { %v1631_v13 = vadd.f32 %v1100_v10, %v407_v9  ;;  %1392 = vmatmul.f32.gmra.mxu2 %v2312_v16  ;;  %v763_v17 = vpop.f32.mrf.mxu0  ;;  %v876_v20 = vpop.f32.mrf.mxu1  ;;  %1505 = vmatmul.f32.gmra.mxu3 %v2313_v21  ;;  %v2320_v10 = vld [vmem:[%s2976_s26 + $0x70] sm:$0xff] }
 0x1d9   : > { %v877_v28 = vadd.f32 %v876_v20, %v763_v17  ;;  %v2321_v17 = vld [vmem:[%s2976_s26 + $0x78] sm:$0xff] }
 0x1da   : > { %1695 = vst [vmem:[#allocation2 + $0x148] sm:$0xff] %v1631_v13 }
 0x1db   : > { %v989_v29 = vpop.f32.mrf.mxu2  ;;  %1166 = vmatmul.f32.gmra.mxu0 %v2314_v30  ;;  %1279 = vmatmul.f32.gmra.mxu1 %v2315_v35  ;;  %v1102_v40 = vpop.f32.mrf.mxu3 }
 0x1dc   : > { %v990_v43 = vadd.f32 %v989_v29, %v877_v28  ;;  %v2322_v28 = vld [vmem:[%s2976_s26 + $0x60] sm:$0xff]  ;;  %v2323_v29 = vld [vmem:[%s2976_s26 + $0x68] sm:$0xff] }
 0x1de   : > { %v1103_v45 = vadd.f32 %v1102_v40, %v990_v43  ;;  %v413_v40 = vld [vmem:[#allocation2 + $0x20] sm:$0xff] }
 0x1e0   : > { %v1633_v46 = vadd.f32 %v1103_v45, %v409_v44  ;;  %1395 = vmatmul.f32.gmra.mxu2 %v2316_v47  ;;  %v766_v52 = vpop.f32.mrf.mxu0  ;;  %v879_v53 = vpop.f32.mrf.mxu1  ;;  %1508 = vmatmul.f32.gmra.mxu3 %v2317_v56  ;;  %v2324_v45 = vld [vmem:[%s2976_s26 + $0x90] sm:$0xff] }
 0x1e1   : > { %v880_v57 = vadd.f32 %v879_v53, %v766_v52  ;;  %v2325_v52 = vld [vmem:[%s2976_s26 + $0x98] sm:$0xff] }
 0x1e2   : > { %1697 = vst [vmem:[#allocation2 + $0x100] sm:$0xff] %v1633_v46 }
 0x1e3   : > { %v992_v60 = vpop.f32.mrf.mxu2  ;;  %1169 = vmatmul.f32.gmra.mxu0 %v2318_v63  ;;  %1282 = vmatmul.f32.gmra.mxu1 %v2319_v0  ;;  %v1105_v1 = vpop.f32.mrf.mxu3 }
 0x1e4   : > { %v993_v2 = vadd.f32 %v992_v60, %v880_v57  ;;  %v2326_v57 = vld [vmem:[%s2976_s26 + $0x80] sm:$0xff]  ;;  %v2327_v60 = vld [vmem:[%s2976_s26 + $0x88] sm:$0xff] }
 0x1e6   : > { %v1106_v8 = vadd.f32 %v1105_v1, %v993_v2  ;;  %v415_v1 = vld [vmem:[#allocation2 + $0x1a0] sm:$0xff] }
 0x1e8   : > { %v1635_v9 = vadd.f32 %v1106_v8, %v411_v7  ;;  %1398 = vmatmul.f32.gmra.mxu2 %v2320_v10  ;;  %v769_v13 = vpop.f32.mrf.mxu0  ;;  %v882_v16 = vpop.f32.mrf.mxu1  ;;  %1511 = vmatmul.f32.gmra.mxu3 %v2321_v17  ;;  %v2328_v8 = vld [vmem:[%s2976_s26 + $0xb0] sm:$0xff] }
 0x1e9   : > { %v883_v20 = vadd.f32 %v882_v16, %v769_v13  ;;  %v2329_v13 = vld [vmem:[%s2976_s26 + $0xb8] sm:$0xff] }
 0x1ea   : > { %1699 = vst [vmem:[#allocation2 + $0x40] sm:$0xff] %v1635_v9 }
 0x1eb   : > { %v995_v21 = vpop.f32.mrf.mxu2  ;;  %1172 = vmatmul.f32.gmra.mxu0 %v2322_v28  ;;  %1285 = vmatmul.f32.gmra.mxu1 %v2323_v29  ;;  %v1108_v30 = vpop.f32.mrf.mxu3 }
 0x1ec   : > { %v996_v35 = vadd.f32 %v995_v21, %v883_v20  ;;  %v2330_v20 = vld [vmem:[%s2976_s26 + $0xa0] sm:$0xff]  ;;  %v2331_v21 = vld [vmem:[%s2976_s26 + $0xa8] sm:$0xff] }
 0x1ee   : > { %v1109_v43 = vadd.f32 %v1108_v30, %v996_v35  ;;  %v417_v30 = vld [vmem:[#allocation2 + $0xe8] sm:$0xff] }
 0x1f0   : > { %v1637_v44 = vadd.f32 %v1109_v43, %v413_v40  ;;  %1401 = vmatmul.f32.gmra.mxu2 %v2324_v45  ;;  %v772_v46 = vpop.f32.mrf.mxu0  ;;  %v885_v47 = vpop.f32.mrf.mxu1  ;;  %1514 = vmatmul.f32.gmra.mxu3 %v2325_v52  ;;  %v2332_v43 = vld [vmem:[%s2976_s26 + $0xd0] sm:$0xff] }
 0x1f1   : > { %v886_v53 = vadd.f32 %v885_v47, %v772_v46  ;;  %v2333_v46 = vld [vmem:[%s2976_s26 + $0xd8] sm:$0xff] }
 0x1f2   : > { %1701 = vst [vmem:[#allocation2 + $0x20] sm:$0xff] %v1637_v44 }
 0x1f3   : > { %v998_v56 = vpop.f32.mrf.mxu2  ;;  %1175 = vmatmul.f32.gmra.mxu0 %v2326_v57  ;;  %1288 = vmatmul.f32.gmra.mxu1 %v2327_v60  ;;  %v1111_v63 = vpop.f32.mrf.mxu3 }
 0x1f4   : > { %v999_v0 = vadd.f32 %v998_v56, %v886_v53  ;;  %v2334_v53 = vld [vmem:[%s2976_s26 + $0xc0] sm:$0xff]  ;;  %v2335_v56 = vld [vmem:[%s2976_s26 + $0xc8] sm:$0xff] }
 0x1f6   : > { %v1112_v2 = vadd.f32 %v1111_v63, %v999_v0  ;;  %v419_v63 = vld [vmem:[#allocation2 + $0x70] sm:$0xff] }
 0x1f8   : > { %v1639_v7 = vadd.f32 %v1112_v2, %v415_v1  ;;  %1404 = vmatmul.f32.gmra.mxu2 %v2328_v8  ;;  %v775_v9 = vpop.f32.mrf.mxu0  ;;  %v888_v10 = vpop.f32.mrf.mxu1  ;;  %1517 = vmatmul.f32.gmra.mxu3 %v2329_v13  ;;  %v2336_v2 = vld [vmem:[%s2976_s26 + $0xf0] sm:$0xff] }
 0x1f9   : > { %v889_v16 = vadd.f32 %v888_v10, %v775_v9  ;;  %v2337_v9 = vld [vmem:[%s2976_s26 + $0xf8] sm:$0xff] }
 0x1fa   : > { %1703 = vst [vmem:[#allocation2 + $0x1a0] sm:$0xff] %v1639_v7 }
 0x1fb   : > { %v1001_v17 = vpop.f32.mrf.mxu2  ;;  %1178 = vmatmul.f32.gmra.mxu0 %v2330_v20  ;;  %1291 = vmatmul.f32.gmra.mxu1 %v2331_v21  ;;  %v1114_v28 = vpop.f32.mrf.mxu3 }
 0x1fc   : > { %v1002_v29 = vadd.f32 %v1001_v17, %v889_v16  ;;  %v2338_v16 = vld [vmem:[%s2976_s26 + $0xe0] sm:$0xff]  ;;  %v2339_v17 = vld [vmem:[%s2976_s26 + $0xe8] sm:$0xff] }
 0x1fe   : > { %v1115_v35 = vadd.f32 %v1114_v28, %v1002_v29  ;;  %v421_v28 = vld [vmem:[#allocation2 + $0x1d8] sm:$0xff] }
 0x200   : > { %v1641_v40 = vadd.f32 %v1115_v35, %v417_v30  ;;  %1407 = vmatmul.f32.gmra.mxu2 %v2332_v43  ;;  %v778_v44 = vpop.f32.mrf.mxu0  ;;  %v891_v45 = vpop.f32.mrf.mxu1  ;;  %1520 = vmatmul.f32.gmra.mxu3 %v2333_v46  ;;  %v2340_v35 = vld [vmem:[%s2976_s26 + $0x110] sm:$0xff] }
 0x201   : > { %v892_v47 = vadd.f32 %v891_v45, %v778_v44  ;;  %v2341_v44 = vld [vmem:[%s2976_s26 + $0x118] sm:$0xff] }
 0x202   : > { %1705 = vst [vmem:[#allocation2 + $0xe8] sm:$0xff] %v1641_v40 }
 0x203   : > { %v1004_v52 = vpop.f32.mrf.mxu2  ;;  %1181 = vmatmul.f32.gmra.mxu0 %v2334_v53  ;;  %1294 = vmatmul.f32.gmra.mxu1 %v2335_v56  ;;  %v1117_v57 = vpop.f32.mrf.mxu3 }
 0x204   : > { %v1005_v60 = vadd.f32 %v1004_v52, %v892_v47  ;;  %v2342_v47 = vld [vmem:[%s2976_s26 + $0x100] sm:$0xff]  ;;  %v2343_v52 = vld [vmem:[%s2976_s26 + $0x108] sm:$0xff] }
 0x206   : > { %v1118_v0 = vadd.f32 %v1117_v57, %v1005_v60  ;;  %v423_v57 = vld [vmem:[#allocation2 + $0xb8] sm:$0xff] }
 0x208   : > { %v1643_v1 = vadd.f32 %v1118_v0, %v419_v63  ;;  %1410 = vmatmul.f32.gmra.mxu2 %v2336_v2  ;;  %v781_v7 = vpop.f32.mrf.mxu0  ;;  %v894_v8 = vpop.f32.mrf.mxu1  ;;  %1523 = vmatmul.f32.gmra.mxu3 %v2337_v9  ;;  %v2344_v0 = vld [vmem:[%s2976_s26 + $0x130] sm:$0xff] }
 0x209   : > { %v895_v10 = vadd.f32 %v894_v8, %v781_v7  ;;  %v2345_v7 = vld [vmem:[%s2976_s26 + $0x138] sm:$0xff] }
 0x20a   : > { %1707 = vst [vmem:[#allocation2 + $0x70] sm:$0xff] %v1643_v1 }
 0x20b   : > { %v1007_v13 = vpop.f32.mrf.mxu2  ;;  %1184 = vmatmul.f32.gmra.mxu0 %v2338_v16  ;;  %1297 = vmatmul.f32.gmra.mxu1 %v2339_v17  ;;  %v1120_v20 = vpop.f32.mrf.mxu3 }
 0x20c   : > { %v1008_v21 = vadd.f32 %v1007_v13, %v895_v10  ;;  %v2346_v10 = vld [vmem:[%s2976_s26 + $0x120] sm:$0xff]  ;;  %v2347_v13 = vld [vmem:[%s2976_s26 + $0x128] sm:$0xff] }
 0x20e   : > { %v1121_v29 = vadd.f32 %v1120_v20, %v1008_v21  ;;  %v425_v20 = vld [vmem:[#allocation2 + $0xa8] sm:$0xff] }
 0x210   : > { %v1645_v30 = vadd.f32 %v1121_v29, %v421_v28  ;;  %1413 = vmatmul.f32.gmra.mxu2 %v2340_v35  ;;  %v784_v40 = vpop.f32.mrf.mxu0  ;;  %v897_v43 = vpop.f32.mrf.mxu1  ;;  %1526 = vmatmul.f32.gmra.mxu3 %v2341_v44  ;;  %v2348_v29 = vld [vmem:[%s2976_s26 + $0x150] sm:$0xff] }
 0x211   : > { %v898_v45 = vadd.f32 %v897_v43, %v784_v40  ;;  %v2349_v40 = vld [vmem:[%s2976_s26 + $0x158] sm:$0xff] }
 0x212   : > { %1709 = vst [vmem:[#allocation2 + $0x1d8] sm:$0xff] %v1645_v30 }
 0x213   : > { %v1010_v46 = vpop.f32.mrf.mxu2  ;;  %1187 = vmatmul.f32.gmra.mxu0 %v2342_v47  ;;  %1300 = vmatmul.f32.gmra.mxu1 %v2343_v52  ;;  %v1123_v53 = vpop.f32.mrf.mxu3 }
 0x214   : > { %v1011_v56 = vadd.f32 %v1010_v46, %v898_v45  ;;  %v2350_v45 = vld [vmem:[%s2976_s26 + $0x140] sm:$0xff]  ;;  %v2351_v46 = vld [vmem:[%s2976_s26 + $0x148] sm:$0xff] }
 0x216   : > { %v1124_v60 = vadd.f32 %v1123_v53, %v1011_v56  ;;  %v427_v53 = vld [vmem:[#allocation2 + $0x170] sm:$0xff] }
 0x218   : > { %v1647_v63 = vadd.f32 %v1124_v60, %v423_v57  ;;  %1416 = vmatmul.f32.gmra.mxu2 %v2344_v0  ;;  %v787_v1 = vpop.f32.mrf.mxu0  ;;  %v900_v2 = vpop.f32.mrf.mxu1  ;;  %1529 = vmatmul.f32.gmra.mxu3 %v2345_v7  ;;  %v2352_v60 = vld [vmem:[%s2976_s26 + $0x170] sm:$0xff] }
 0x219   : > { %v901_v8 = vadd.f32 %v900_v2, %v787_v1  ;;  %v2353_v1 = vld [vmem:[%s2976_s26 + $0x178] sm:$0xff] }
 0x21a   : > { %1711 = vst [vmem:[#allocation2 + $0xb8] sm:$0xff] %v1647_v63 }
 0x21b   : > { %v1013_v9 = vpop.f32.mrf.mxu2  ;;  %1190 = vmatmul.f32.gmra.mxu0 %v2346_v10  ;;  %1303 = vmatmul.f32.gmra.mxu1 %v2347_v13  ;;  %v1126_v16 = vpop.f32.mrf.mxu3 }
 0x21c   : > { %v1014_v17 = vadd.f32 %v1013_v9, %v901_v8  ;;  %v2354_v8 = vld [vmem:[%s2976_s26 + $0x160] sm:$0xff]  ;;  %v2355_v9 = vld [vmem:[%s2976_s26 + $0x168] sm:$0xff] }
 0x21e   : > { %v1127_v21 = vadd.f32 %v1126_v16, %v1014_v17  ;;  %v429_v16 = vld [vmem:[#allocation2 + $0x68] sm:$0xff] }
 0x220   : > { %v1649_v28 = vadd.f32 %v1127_v21, %v425_v20  ;;  %1419 = vmatmul.f32.gmra.mxu2 %v2348_v29  ;;  %v790_v30 = vpop.f32.mrf.mxu0  ;;  %v903_v35 = vpop.f32.mrf.mxu1  ;;  %1532 = vmatmul.f32.gmra.mxu3 %v2349_v40  ;;  %v2356_v21 = vld [vmem:[%s2976_s26 + $0x190] sm:$0xff] }
 0x221   : > { %v904_v43 = vadd.f32 %v903_v35, %v790_v30  ;;  %v2357_v30 = vld [vmem:[%s2976_s26 + $0x198] sm:$0xff] }
 0x222   : > { %1713 = vst [vmem:[#allocation2 + $0xa8] sm:$0xff] %v1649_v28 }
 0x223   : > { %v1016_v44 = vpop.f32.mrf.mxu2  ;;  %1193 = vmatmul.f32.gmra.mxu0 %v2350_v45  ;;  %1306 = vmatmul.f32.gmra.mxu1 %v2351_v46  ;;  %v1129_v47 = vpop.f32.mrf.mxu3 }
 0x224   : > { %v1017_v52 = vadd.f32 %v1016_v44, %v904_v43  ;;  %v2358_v43 = vld [vmem:[%s2976_s26 + $0x180] sm:$0xff]  ;;  %v2359_v44 = vld [vmem:[%s2976_s26 + $0x188] sm:$0xff] }
 0x226   : > { %v1130_v56 = vadd.f32 %v1129_v47, %v1017_v52  ;;  %v431_v47 = vld [vmem:[#allocation2 + $0x198] sm:$0xff] }
 0x228   : > { %v1651_v57 = vadd.f32 %v1130_v56, %v427_v53  ;;  %1422 = vmatmul.f32.gmra.mxu2 %v2352_v60  ;;  %v793_v63 = vpop.f32.mrf.mxu0  ;;  %v906_v0 = vpop.f32.mrf.mxu1  ;;  %1535 = vmatmul.f32.gmra.mxu3 %v2353_v1  ;;  %v2360_v56 = vld [vmem:[%s2976_s26 + $0x1b0] sm:$0xff] }
 0x229   : > { %v907_v2 = vadd.f32 %v906_v0, %v793_v63  ;;  %v2361_v63 = vld [vmem:[%s2976_s26 + $0x1b8] sm:$0xff] }
 0x22a   : > { %1715 = vst [vmem:[#allocation2 + $0x170] sm:$0xff] %v1651_v57 }
 0x22b   : > { %v1019_v7 = vpop.f32.mrf.mxu2  ;;  %1196 = vmatmul.f32.gmra.mxu0 %v2354_v8  ;;  %1309 = vmatmul.f32.gmra.mxu1 %v2355_v9  ;;  %v1132_v10 = vpop.f32.mrf.mxu3 }
 0x22c   : > { %v1020_v13 = vadd.f32 %v1019_v7, %v907_v2  ;;  %v2362_v2 = vld [vmem:[%s2976_s26 + $0x1a0] sm:$0xff]  ;;  %v2363_v7 = vld [vmem:[%s2976_s26 + $0x1a8] sm:$0xff] }
 0x22e   : > { %v1133_v17 = vadd.f32 %v1132_v10, %v1020_v13  ;;  %v433_v10 = vld [vmem:[#allocation2 + $0xc0] sm:$0xff] }
 0x230   : > { %v1653_v20 = vadd.f32 %v1133_v17, %v429_v16  ;;  %1425 = vmatmul.f32.gmra.mxu2 %v2356_v21  ;;  %v796_v28 = vpop.f32.mrf.mxu0  ;;  %v909_v29 = vpop.f32.mrf.mxu1  ;;  %1538 = vmatmul.f32.gmra.mxu3 %v2357_v30  ;;  %v2364_v17 = vld [vmem:[%s2976_s26 + $0x1d0] sm:$0xff] }
 0x231   : > { %v910_v35 = vadd.f32 %v909_v29, %v796_v28  ;;  %v2365_v28 = vld [vmem:[%s2976_s26 + $0x1d8] sm:$0xff] }
 0x232   : > { %1717 = vst [vmem:[#allocation2 + $0x68] sm:$0xff] %v1653_v20 }
 0x233   : > { %v1022_v40 = vpop.f32.mrf.mxu2  ;;  %1199 = vmatmul.f32.gmra.mxu0 %v2358_v43  ;;  %1312 = vmatmul.f32.gmra.mxu1 %v2359_v44  ;;  %v1135_v45 = vpop.f32.mrf.mxu3 }
 0x234   : > { %v1023_v46 = vadd.f32 %v1022_v40, %v910_v35  ;;  %v2366_v35 = vld [vmem:[%s2976_s26 + $0x1c0] sm:$0xff]  ;;  %v2367_v40 = vld [vmem:[%s2976_s26 + $0x1c8] sm:$0xff] }
 0x236   : > { %v1136_v52 = vadd.f32 %v1135_v45, %v1023_v46  ;;  %v435_v45 = vld [vmem:[#allocation2 + $0x158] sm:$0xff] }
 0x238   : > { %v1655_v53 = vadd.f32 %v1136_v52, %v431_v47  ;;  %1428 = vmatmul.f32.gmra.mxu2 %v2360_v56  ;;  %v799_v57 = vpop.f32.mrf.mxu0  ;;  %v912_v60 = vpop.f32.mrf.mxu1  ;;  %1541 = vmatmul.f32.gmra.mxu3 %v2361_v63  ;;  %v2368_v52 = vld [vmem:[%s2976_s26 + $0x1f0] sm:$0xff] }
 0x239   : > { %v913_v0 = vadd.f32 %v912_v60, %v799_v57  ;;  %v2369_v57 = vld [vmem:[%s2976_s26 + $0x1f8] sm:$0xff] }
 0x23a   : > { %1719 = vst [vmem:[#allocation2 + $0x198] sm:$0xff] %v1655_v53 }
 0x23b   : > { %v1025_v1 = vpop.f32.mrf.mxu2  ;;  %1202 = vmatmul.f32.gmra.mxu0 %v2362_v2  ;;  %1315 = vmatmul.f32.gmra.mxu1 %v2363_v7  ;;  %v1138_v8 = vpop.f32.mrf.mxu3 }
 0x23c   : > { %v1026_v9 = vadd.f32 %v1025_v1, %v913_v0  ;;  %v2370_v0 = vld [vmem:[%s2976_s26 + $0x1e0] sm:$0xff]  ;;  %v2371_v1 = vld [vmem:[%s2976_s26 + $0x1e8] sm:$0xff] }
 0x23e   : > { %v1139_v13 = vadd.f32 %v1138_v8, %v1026_v9  ;;  %v437_v8 = vld [vmem:[#allocation2 + $0x58] sm:$0xff] }
 0x240   : > { %v1657_v16 = vadd.f32 %v1139_v13, %v433_v10  ;;  %1431 = vmatmul.f32.gmra.mxu2 %v2364_v17  ;;  %v802_v20 = vpop.f32.mrf.mxu0  ;;  %v915_v21 = vpop.f32.mrf.mxu1  ;;  %1544 = vmatmul.f32.gmra.mxu3 %v2365_v28  ;;  %v2372_v13 = vld [vmem:[%s2976_s26 + $0x210] sm:$0xff] }
 0x241   : > { %v916_v29 = vadd.f32 %v915_v21, %v802_v20  ;;  %v2373_v20 = vld [vmem:[%s2976_s26 + $0x218] sm:$0xff] }
 0x242   : > { %1721 = vst [vmem:[#allocation2 + $0xc0] sm:$0xff] %v1657_v16 }
 0x243   : > { %v1028_v30 = vpop.f32.mrf.mxu2  ;;  %1205 = vmatmul.f32.gmra.mxu0 %v2366_v35  ;;  %1318 = vmatmul.f32.gmra.mxu1 %v2367_v40  ;;  %v1141_v43 = vpop.f32.mrf.mxu3 }
 0x244   : > { %v1029_v44 = vadd.f32 %v1028_v30, %v916_v29  ;;  %v2374_v29 = vld [vmem:[%s2976_s26 + $0x200] sm:$0xff]  ;;  %v2375_v30 = vld [vmem:[%s2976_s26 + $0x208] sm:$0xff] }
 0x246   : > { %v1142_v46 = vadd.f32 %v1141_v43, %v1029_v44  ;;  %v376_v43 = vld [vmem:[#allocation2 + $0x1b0] sm:$0xff] }
 0x248   : > { %v1659_v47 = vadd.f32 %v1142_v46, %v435_v45  ;;  %1434 = vmatmul.f32.gmra.mxu2 %v2368_v52  ;;  %v805_v53 = vpop.f32.mrf.mxu0  ;;  %v918_v56 = vpop.f32.mrf.mxu1  ;;  %1547 = vmatmul.f32.gmra.mxu3 %v2369_v57  ;;  %v2376_v46 = vld [vmem:[%s2976_s26 + $0x230] sm:$0xff] }
 0x249   : > { %v919_v60 = vadd.f32 %v918_v56, %v805_v53  ;;  %v2377_v53 = vld [vmem:[%s2976_s26 + $0x238] sm:$0xff] }
 0x24a   : > { %1723 = vst [vmem:[#allocation2 + $0x158] sm:$0xff] %v1659_v47 }
 0x24b   : > { %v1031_v63 = vpop.f32.mrf.mxu2  ;;  %1208 = vmatmul.f32.gmra.mxu0 %v2370_v0  ;;  %1321 = vmatmul.f32.gmra.mxu1 %v2371_v1  ;;  %v1144_v2 = vpop.f32.mrf.mxu3 }
 0x24c   : > { %v1032_v7 = vadd.f32 %v1031_v63, %v919_v60  ;;  %v2378_v60 = vld [vmem:[%s2976_s26 + $0x220] sm:$0xff]  ;;  %v2379_v63 = vld [vmem:[%s2976_s26 + $0x228] sm:$0xff] }
 0x24e   : > { %v1145_v9 = vadd.f32 %v1144_v2, %v1032_v7  ;;  %v378_v2 = vld [vmem:[#allocation2 + $0x18] sm:$0xff] }
 0x250   : > { %v1661_v10 = vadd.f32 %v1145_v9, %v437_v8  ;;  %1437 = vmatmul.f32.gmra.mxu2 %v2372_v13  ;;  %v1164_v16 = vpop.f32.mrf.mxu0  ;;  %v1277_v17 = vpop.f32.mrf.mxu1  ;;  %1550 = vmatmul.f32.gmra.mxu3 %v2373_v20  ;;  %v2380_v9 = vld [vmem:[%s2976_s26 + $0x250] sm:$0xff] }
 0x251   : > { %v1278_v21 = vadd.f32 %v1277_v17, %v1164_v16  ;;  %v2381_v16 = vld [vmem:[%s2976_s26 + $0x258] sm:$0xff] }
 0x252   : > { %1725 = vst [vmem:[#allocation2 + $0x58] sm:$0xff] %v1661_v10 }
 0x253   : > { %v1390_v28 = vpop.f32.mrf.mxu2  ;;  %1211 = vmatmul.f32.gmra.mxu0 %v2374_v29  ;;  %1324 = vmatmul.f32.gmra.mxu1 %v2375_v30  ;;  %v1503_v35 = vpop.f32.mrf.mxu3 }
 0x254   : > { %v1391_v40 = vadd.f32 %v1390_v28, %v1278_v21  ;;  %v2382_v21 = vld [vmem:[%s2976_s26 + $0x240] sm:$0xff]  ;;  %v2383_v28 = vld [vmem:[%s2976_s26 + $0x248] sm:$0xff] }
 0x256   : > { %v1504_v44 = vadd.f32 %v1503_v35, %v1391_v40  ;;  %v380_v35 = vld [vmem:[#allocation2 + $0x168] sm:$0xff] }
 0x258   : > { %v1600_v45 = vadd.f32 %v1504_v44, %v376_v43  ;;  %1440 = vmatmul.f32.gmra.mxu2 %v2376_v46  ;;  %v1167_v47 = vpop.f32.mrf.mxu0  ;;  %v1280_v52 = vpop.f32.mrf.mxu1  ;;  %1553 = vmatmul.f32.gmra.mxu3 %v2377_v53  ;;  %v2384_v44 = vld [vmem:[%s2976_s26 + $0x270] sm:$0xff] }
 0x259   : > { %v1281_v56 = vadd.f32 %v1280_v52, %v1167_v47  ;;  %v2385_v47 = vld [vmem:[%s2976_s26 + $0x278] sm:$0xff] }
 0x25a   : > { %1664 = vst [vmem:[#allocation2 + $0x1b0] sm:$0xff] %v1600_v45 }
 0x25b   : > { %v1393_v57 = vpop.f32.mrf.mxu2  ;;  %1214 = vmatmul.f32.gmra.mxu0 %v2378_v60  ;;  %1327 = vmatmul.f32.gmra.mxu1 %v2379_v63  ;;  %v1506_v0 = vpop.f32.mrf.mxu3 }
 0x25c   : > { %v1394_v1 = vadd.f32 %v1393_v57, %v1281_v56  ;;  %v2386_v56 = vld [vmem:[%s2976_s26 + $0x260] sm:$0xff]  ;;  %v2387_v57 = vld [vmem:[%s2976_s26 + $0x268] sm:$0xff] }
 0x25e   : > { %v1507_v7 = vadd.f32 %v1506_v0, %v1394_v1  ;;  %v382_v0 = vld [vmem:[#allocation2 + $0x48] sm:$0xff] }
 0x260   : > { %v1602_v8 = vadd.f32 %v1507_v7, %v378_v2  ;;  %1443 = vmatmul.f32.gmra.mxu2 %v2380_v9  ;;  %v1170_v10 = vpop.f32.mrf.mxu0  ;;  %v1283_v13 = vpop.f32.mrf.mxu1  ;;  %1556 = vmatmul.f32.gmra.mxu3 %v2381_v16  ;;  %v2388_v7 = vld [vmem:[%s2976_s26 + $0x290] sm:$0xff] }
 0x261   : > { %v1284_v17 = vadd.f32 %v1283_v13, %v1170_v10  ;;  %v2389_v10 = vld [vmem:[%s2976_s26 + $0x298] sm:$0xff] }
 0x262   : > { %1666 = vst [vmem:[#allocation2 + $0x18] sm:$0xff] %v1602_v8 }
 0x263   : > { %v1396_v20 = vpop.f32.mrf.mxu2  ;;  %1217 = vmatmul.f32.gmra.mxu0 %v2382_v21  ;;  %1330 = vmatmul.f32.gmra.mxu1 %v2383_v28  ;;  %v1509_v29 = vpop.f32.mrf.mxu3 }
 0x264   : > { %v1397_v30 = vadd.f32 %v1396_v20, %v1284_v17  ;;  %v2390_v17 = vld [vmem:[%s2976_s26 + $0x280] sm:$0xff]  ;;  %v2391_v20 = vld [vmem:[%s2976_s26 + $0x288] sm:$0xff] }
 0x266   : > { %v1510_v40 = vadd.f32 %v1509_v29, %v1397_v30  ;;  %v384_v29 = vld [vmem:[#allocation2 + $0x110] sm:$0xff] }
 0x268   : > { %v1604_v43 = vadd.f32 %v1510_v40, %v380_v35  ;;  %1446 = vmatmul.f32.gmra.mxu2 %v2384_v44  ;;  %v1173_v45 = vpop.f32.mrf.mxu0  ;;  %v1286_v46 = vpop.f32.mrf.mxu1  ;;  %1559 = vmatmul.f32.gmra.mxu3 %v2385_v47  ;;  %v2392_v40 = vld [vmem:[%s2976_s26 + $0x2b0] sm:$0xff] }
 0x269   : > { %v1287_v52 = vadd.f32 %v1286_v46, %v1173_v45  ;;  %v2393_v45 = vld [vmem:[%s2976_s26 + $0x2b8] sm:$0xff] }
 0x26a   : > { %1668 = vst [vmem:[#allocation2 + $0x168] sm:$0xff] %v1604_v43 }
 0x26b   : > { %v1399_v53 = vpop.f32.mrf.mxu2  ;;  %1220 = vmatmul.f32.gmra.mxu0 %v2386_v56  ;;  %1333 = vmatmul.f32.gmra.mxu1 %v2387_v57  ;;  %v1512_v60 = vpop.f32.mrf.mxu3 }
 0x26c   : > { %v1400_v63 = vadd.f32 %v1399_v53, %v1287_v52  ;;  %v2394_v52 = vld [vmem:[%s2976_s26 + $0x2a0] sm:$0xff]  ;;  %v2395_v53 = vld [vmem:[%s2976_s26 + $0x2a8] sm:$0xff] }
 0x26e   : > { %v1513_v1 = vadd.f32 %v1512_v60, %v1400_v63  ;;  %v386_v60 = vld [vmem:[#allocation2 + $0x98] sm:$0xff] }
 0x270   : > { %v1606_v2 = vadd.f32 %v1513_v1, %v382_v0  ;;  %1449 = vmatmul.f32.gmra.mxu2 %v2388_v7  ;;  %v1176_v8 = vpop.f32.mrf.mxu0  ;;  %v1289_v9 = vpop.f32.mrf.mxu1  ;;  %1562 = vmatmul.f32.gmra.mxu3 %v2389_v10  ;;  %v2396_v1 = vld [vmem:[%s2976_s26 + $0x2d0] sm:$0xff] }
 0x271   : > { %v1290_v13 = vadd.f32 %v1289_v9, %v1176_v8  ;;  %v2397_v8 = vld [vmem:[%s2976_s26 + $0x2d8] sm:$0xff] }
 0x272   : > { %1670 = vst [vmem:[#allocation2 + $0x48] sm:$0xff] %v1606_v2 }
 0x273   : > { %v1402_v16 = vpop.f32.mrf.mxu2  ;;  %1223 = vmatmul.f32.gmra.mxu0 %v2390_v17  ;;  %1336 = vmatmul.f32.gmra.mxu1 %v2391_v20  ;;  %v1515_v21 = vpop.f32.mrf.mxu3 }
 0x274   : > { %v1403_v28 = vadd.f32 %v1402_v16, %v1290_v13  ;;  %v2398_v13 = vld [vmem:[%s2976_s26 + $0x2c0] sm:$0xff]  ;;  %v2399_v16 = vld [vmem:[%s2976_s26 + $0x2c8] sm:$0xff] }
 0x276   : > { %v1516_v30 = vadd.f32 %v1515_v21, %v1403_v28  ;;  %v388_v21 = vld [vmem:[#allocation2 + $0x150] sm:$0xff] }
 0x278   : > { %v1608_v35 = vadd.f32 %v1516_v30, %v384_v29  ;;  %1452 = vmatmul.f32.gmra.mxu2 %v2392_v40  ;;  %v1179_v43 = vpop.f32.mrf.mxu0  ;;  %v1292_v44 = vpop.f32.mrf.mxu1  ;;  %1565 = vmatmul.f32.gmra.mxu3 %v2393_v45 }
 0x279   : > { %v1293_v46 = vadd.f32 %v1292_v44, %v1179_v43 }
 0x27a   : > { %1672 = vst [vmem:[#allocation2 + $0x110] sm:$0xff] %v1608_v35 }
 0x27b   : > { %v1405_v47 = vpop.f32.mrf.mxu2  ;;  %1226 = vmatmul.f32.gmra.mxu0 %v2394_v52  ;;  %1339 = vmatmul.f32.gmra.mxu1 %v2395_v53  ;;  %v1518_v56 = vpop.f32.mrf.mxu3 }
 0x27c   : > { %v1406_v57 = vadd.f32 %v1405_v47, %v1293_v46  ;;  %v390_v46 = vld [vmem:[#allocation2 + $0x60] sm:$0xff] }
 0x27e   : > { %v1519_v63 = vadd.f32 %v1518_v56, %v1406_v57  ;;  %v392_v57 = vld [vmem:[#allocation2 + $0x188] sm:$0xff] }
 0x280   : > { %v1610_v0 = vadd.f32 %v1519_v63, %v386_v60  ;;  %1455 = vmatmul.f32.gmra.mxu2 %v2396_v1  ;;  %v1182_v2 = vpop.f32.mrf.mxu0  ;;  %v1295_v7 = vpop.f32.mrf.mxu1  ;;  %1568 = vmatmul.f32.gmra.mxu3 %v2397_v8 }
 0x281   : > { %v1296_v9 = vadd.f32 %v1295_v7, %v1182_v2  ;;  %v394_v2 = vld [vmem:[#allocation2 + $0x140] sm:$0xff] }
 0x282   : > { %1674 = vst [vmem:[#allocation2 + $0x98] sm:$0xff] %v1610_v0 }
 0x283   : > { %v1408_v10 = vpop.f32.mrf.mxu2  ;;  %1229 = vmatmul.f32.gmra.mxu0 %v2398_v13  ;;  %1342 = vmatmul.f32.gmra.mxu1 %v2399_v16  ;;  %v1521_v17 = vpop.f32.mrf.mxu3  ;;  %v396_v13 = vld [vmem:[#allocation2 + $0x1a8] sm:$0xff] }
 0x284   : > { %v1409_v20 = vadd.f32 %v1408_v10, %v1296_v9 }
 0x286   : > { %v1522_v28 = vadd.f32 %v1521_v17, %v1409_v20 }
 0x288   : > { %v1612_v29 = vadd.f32 %v1522_v28, %v388_v21  ;;  %1458 = vmatmul.f32.gmra.mxu2 %v3281_v18  ;;  %v1185_v30 = vpop.f32.mrf.mxu0  ;;  %v1298_v35 = vpop.f32.mrf.mxu1  ;;  %1571 = vmatmul.f32.gmra.mxu3 %v3284_v19  ;;  %v398_v28 = vld [vmem:[#allocation2 + $0x28] sm:$0xff] }
 0x289   : > { %v1299_v40 = vadd.f32 %v1298_v35, %v1185_v30 }
 0x28a   : > { %1676 = vst [vmem:[#allocation2 + $0x150] sm:$0xff] %v1612_v29 }
 0x28b   : > { %v1411_v43 = vpop.f32.mrf.mxu2  ;;  %1232 = vmatmul.f32.gmra.mxu0 %v3289_v24  ;;  %1345 = vmatmul.f32.gmra.mxu1 %v3292_v25  ;;  %v1524_v44 = vpop.f32.mrf.mxu3 }
 0x28c   : > { %v1412_v45 = vadd.f32 %v1411_v43, %v1299_v40  ;;  %v400_v43 = vld [vmem:[#allocation2 + $0xf8] sm:$0xff] }
 0x28e   : > { %v1525_v47 = vadd.f32 %v1524_v44, %v1412_v45 }
 0x290   : > { %v1614_v52 = vadd.f32 %v1525_v47, %v390_v46  ;;  %1461 = vmatmul.f32.gmra.mxu2 %v3297_v31  ;;  %v1188_v53 = vpop.f32.mrf.mxu0  ;;  %v1301_v18 = vpop.f32.mrf.mxu1  ;;  %1574 = vmatmul.f32.gmra.mxu3 %v3300_v32 }
 0x291   : > { %v1302_v56 = vadd.f32 %v1301_v18, %v1188_v53 }
 0x292   : > { %1678 = vst [vmem:[#allocation2 + $0x60] sm:$0xff] %v1614_v52  ;;  %v402_v52 = vld [vmem:[#allocation2 + $0x30] sm:$0xff] }
 0x293   : > { %v1414_v19 = vpop.f32.mrf.mxu2  ;;  %1235 = vmatmul.f32.gmra.mxu0 %v3305_v37  ;;  %1348 = vmatmul.f32.gmra.mxu1 %v3308_v38  ;;  %v1527_v24 = vpop.f32.mrf.mxu3 }
 0x294   : > { %v1415_v25 = vadd.f32 %v1414_v19, %v1302_v56 }
 0x296   : > { %v1528_v60 = vadd.f32 %v1527_v24, %v1415_v25  ;;  %v404_v24 = vld [vmem:[#allocation2] sm:$0xff] }
 0x298   : > { %v1616_v63 = vadd.f32 %v1528_v60, %v392_v57  ;;  %1464 = vmatmul.f32.gmra.mxu2 %v3317_v48  ;;  %v1191_v0 = vpop.f32.mrf.mxu0  ;;  %v1304_v31 = vpop.f32.mrf.mxu1  ;;  %1577 = vmatmul.f32.gmra.mxu3 %v3320_v49 }
 0x299   : > { %v1305_v1 = vadd.f32 %v1304_v31, %v1191_v0  ;;  %v406_v0 = vld [vmem:[#allocation2 + $0x8] sm:$0xff] }
 0x29a   : > { %1680 = vst [vmem:[#allocation2 + $0x188] sm:$0xff] %v1616_v63 }
 0x29b   : > { %v1417_v32 = vpop.f32.mrf.mxu2  ;;  %1238 = vmatmul.f32.gmra.mxu0 %v3325_v54  ;;  %1351 = vmatmul.f32.gmra.mxu1 %v3328_v55  ;;  %v1530_v37 = vpop.f32.mrf.mxu3 }
 0x29c   : > { %v1418_v38 = vadd.f32 %v1417_v32, %v1305_v1 }
 0x29e   : > { %v1531_v7 = vadd.f32 %v1530_v37, %v1418_v38 }
 0x2a0   : > { %v1618_v8 = vadd.f32 %v1531_v7, %v394_v2  ;;  %1467 = vmatmul.f32.gmra.mxu2 %v3333_v61  ;;  %v1194_v9 = vpop.f32.mrf.mxu0  ;;  %v1307_v48 = vpop.f32.mrf.mxu1  ;;  %1580 = vmatmul.f32.gmra.mxu3 %v3336_v62 }
 0x2a1   : > { %v1308_v10 = vadd.f32 %v1307_v48, %v1194_v9 }
 0x2a2   : > { %1682 = vst [vmem:[#allocation2 + $0x140] sm:$0xff] %v1618_v8 }
 0x2a3   : > { %v1420_v49 = vpop.f32.mrf.mxu2  ;;  %1241 = vmatmul.f32.gmra.mxu0 %v3341_v3  ;;  %1354 = vmatmul.f32.gmra.mxu1 %v3344_v4  ;;  %v1533_v54 = vpop.f32.mrf.mxu3 }
 0x2a4   : > { %v1421_v55 = vadd.f32 %v1420_v49, %v1308_v10 }
 0x2a6   : > { %v1534_v16 = vadd.f32 %v1533_v54, %v1421_v55  ;;  %v410_v55 = vld [vmem:[#allocation2 + $0xc8] sm:$0xff] }
 0x2a8   : > { %v1620_v17 = vadd.f32 %v1534_v16, %v396_v13  ;;  %1470 = vmatmul.f32.gmra.mxu2 %v3353_v14  ;;  %v1197_v20 = vpop.f32.mrf.mxu0  ;;  %v1310_v61 = vpop.f32.mrf.mxu1  ;;  %1583 = vmatmul.f32.gmra.mxu3 %v3356_v15 }
 0x2a9   : > { %v1311_v21 = vadd.f32 %v1310_v61, %v1197_v20 }
 0x2aa   : > { %1684 = vst [vmem:[#allocation2 + $0x1a8] sm:$0xff] %v1620_v17 }
 0x2ab   : > { %v1423_v62 = vpop.f32.mrf.mxu2  ;;  %1244 = vmatmul.f32.gmra.mxu0 %v3361_v22  ;;  %1357 = vmatmul.f32.gmra.mxu1 %v3364_v23  ;;  %v1536_v3 = vpop.f32.mrf.mxu3 }
 0x2ac   : > { %v1424_v4 = vadd.f32 %v1423_v62, %v1311_v21 }
 0x2ae   : > { %v1537_v29 = vadd.f32 %v1536_v3, %v1424_v4  ;;  %v412_v4 = vld [vmem:[#allocation2 + $0x1f8] sm:$0xff] }
 0x2b0   : > { %v1622_v30 = vadd.f32 %v1537_v29, %v398_v28  ;;  %1473 = vmatmul.f32.gmra.mxu2 %v3369_v33  ;;  %v1200_v35 = vpop.f32.mrf.mxu0  ;;  %v1313_v14 = vpop.f32.mrf.mxu1  ;;  %1586 = vmatmul.f32.gmra.mxu3 %v3372_v34 }
 0x2b1   : > { %v1314_v40 = vadd.f32 %v1313_v14, %v1200_v35 }
 0x2b2   : > { %1686 = vst [vmem:[#allocation2 + $0x28] sm:$0xff] %v1622_v30 }
 0x2b3   : > { %v1426_v15 = vpop.f32.mrf.mxu2  ;;  %1247 = vmatmul.f32.gmra.mxu0 %v3377_v41  ;;  %1360 = vmatmul.f32.gmra.mxu1 %v3380_v42  ;;  %v1539_v22 = vpop.f32.mrf.mxu3 }
 0x2b4   : > { %v1427_v23 = vadd.f32 %v1426_v15, %v1314_v40 }
 0x2b6   : > { %v1540_v44 = vadd.f32 %v1539_v22, %v1427_v23  ;;  %v414_v23 = vld [vmem:[#allocation2 + $0x128] sm:$0xff] }
 0x2b8   : > { %v1624_v45 = vadd.f32 %v1540_v44, %v400_v43  ;;  %1476 = vmatmul.f32.gmra.mxu2 %v3385_v50  ;;  %v1203_v46 = vpop.f32.mrf.mxu0  ;;  %v1316_v33 = vpop.f32.mrf.mxu1  ;;  %1589 = vmatmul.f32.gmra.mxu3 %v3388_v51 }
 0x2b9   : > { %v1317_v47 = vadd.f32 %v1316_v33, %v1203_v46 }
 0x2ba   : > { %1688 = vst [vmem:[#allocation2 + $0xf8] sm:$0xff] %v1624_v45 }
 0x2bb   : > { %v1429_v34 = vpop.f32.mrf.mxu2  ;;  %1250 = vmatmul.f32.gmra.mxu0 %v3393_v58  ;;  %1363 = vmatmul.f32.gmra.mxu1 %v3396_v59  ;;  %v1542_v41 = vpop.f32.mrf.mxu3 }
 0x2bc   : > { %v1430_v42 = vadd.f32 %v1429_v34, %v1317_v47 }
 0x2be   : > { %v1543_v53 = vadd.f32 %v1542_v41, %v1430_v42  ;;  %v416_v42 = vld [vmem:[#allocation2 + $0x1f0] sm:$0xff] }
 0x2c0   : > { %v1626_v18 = vadd.f32 %v1543_v53, %v402_v52  ;;  %1479 = vmatmul.f32.gmra.mxu2 %v3401_v5  ;;  %v1206_v56 = vpop.f32.mrf.mxu0  ;;  %v1319_v50 = vpop.f32.mrf.mxu1  ;;  %1592 = vmatmul.f32.gmra.mxu3 %v3404_v6 }
 0x2c1   : > { %v1320_v19 = vadd.f32 %v1319_v50, %v1206_v56 }
 0x2c2   : > { %1690 = vst [vmem:[#allocation2 + $0x30] sm:$0xff] %v1626_v18 }
 0x2c3   : > { %v1432_v51 = vpop.f32.mrf.mxu2  ;;  %1253 = vmatmul.f32.gmra.mxu0 %v3409_v11  ;;  %1366 = vmatmul.f32.gmra.mxu1 %v3412_v12  ;;  %v1545_v58 = vpop.f32.mrf.mxu3 }
 0x2c4   : > { %v1433_v59 = vadd.f32 %v1432_v51, %v1320_v19 }
 0x2c6   : > { %v1546_v25 = vadd.f32 %v1545_v58, %v1433_v59  ;;  %v418_v59 = vld [vmem:[#allocation2 + $0x78] sm:$0xff] }
 0x2c8   : > { %v1628_v57 = vadd.f32 %v1546_v25, %v404_v24  ;;  %1482 = vmatmul.f32.gmra.mxu2 %v3417_v26  ;;  %v1209_v60 = vpop.f32.mrf.mxu0  ;;  %v1322_v5 = vpop.f32.mrf.mxu1  ;;  %1595 = vmatmul.f32.gmra.mxu3 %v3420_v27  ;;  %v408_v27 = vld [vmem:[#allocation2 + $0x1d0] sm:$0xff] }
 0x2c9   : > { %v1323_v63 = vadd.f32 %v1322_v5, %v1209_v60 }
 0x2ca   : > { %1692 = vst [vmem:[#allocation2] sm:$0xff] %v1628_v57 }
 0x2cb   : > { %v1435_v6 = vpop.f32.mrf.mxu2  ;;  %1256 = vmatmul.f32.gmra.mxu0 %v3425_v36  ;;  %1369 = vmatmul.f32.gmra.mxu1 %v3428_v39  ;;  %v1548_v11 = vpop.f32.mrf.mxu3 }
 0x2cc   : > { %v1436_v12 = vadd.f32 %v1435_v6, %v1323_v63 }
 0x2ce   : > { %v1549_v31 = vadd.f32 %v1548_v11, %v1436_v12  ;;  %v420_v12 = vld [vmem:[#allocation2 + $0x90] sm:$0xff] }
 0x2d0   : > { %v1630_v1 = vadd.f32 %v1549_v31, %v406_v0  ;;  %v1212_v32 = vpop.f32.mrf.mxu0  ;;  %v1325_v37 = vpop.f32.mrf.mxu1 }
 0x2d1   : > { %v1326_v38 = vadd.f32 %v1325_v37, %v1212_v32 }
 0x2d2   : > { %1694 = vst [vmem:[#allocation2 + $0x8] sm:$0xff] %v1630_v1 }
 0x2d3   : > { %v1438_v26 = vpop.f32.mrf.mxu2  ;;  %v1551_v2 = vpop.f32.mrf.mxu3 }
 0x2d4   : > { %v1439_v7 = vadd.f32 %v1438_v26, %v1326_v38 }
 0x2d6   : > { %v1552_v8 = vadd.f32 %v1551_v2, %v1439_v7  ;;  %v422_v7 = vld [vmem:[#allocation2 + $0xd0] sm:$0xff] }
 0x2d8   : > { %v1632_v9 = vadd.f32 %v1552_v8, %v408_v27  ;;  %v1215_v48 = vpop.f32.mrf.mxu0  ;;  %v1328_v10 = vpop.f32.mrf.mxu1 }
 0x2d9   : > { %v1329_v36 = vadd.f32 %v1328_v10, %v1215_v48 }
 0x2da   : > { %1696 = vst [vmem:[#allocation2 + $0x1d0] sm:$0xff] %v1632_v9 }
 0x2db   : > { %v1441_v39 = vpop.f32.mrf.mxu2  ;;  %v1554_v49 = vpop.f32.mrf.mxu3 }
 0x2dc   : > { %v1442_v54 = vadd.f32 %v1441_v39, %v1329_v36 }
 0x2de   : > { %v1555_v13 = vadd.f32 %v1554_v49, %v1442_v54  ;;  %v424_v54 = vld [vmem:[#allocation2 + $0x88] sm:$0xff] }
 0x2e0   : > { %v1634_v16 = vadd.f32 %v1555_v13, %v410_v55  ;;  %v1218_v17 = vpop.f32.mrf.mxu0  ;;  %v1331_v20 = vpop.f32.mrf.mxu1 }
 0x2e1   : > { %v1332_v61 = vadd.f32 %v1331_v20, %v1218_v17 }
 0x2e2   : > { %1698 = vst [vmem:[#allocation2 + $0xc8] sm:$0xff] %v1634_v16 }
 0x2e3   : > { %v1444_v21 = vpop.f32.mrf.mxu2  ;;  %v1557_v62 = vpop.f32.mrf.mxu3 }
 0x2e4   : > { %v1445_v3 = vadd.f32 %v1444_v21, %v1332_v61 }
 0x2e6   : > { %v1558_v28 = vadd.f32 %v1557_v62, %v1445_v3  ;;  %v426_v3 = vld [vmem:[#allocation2 + $0x1c8] sm:$0xff] }
 0x2e8   : > { %v1636_v29 = vadd.f32 %v1558_v28, %v412_v4  ;;  %v1221_v30 = vpop.f32.mrf.mxu0  ;;  %v1334_v35 = vpop.f32.mrf.mxu1 }
 0x2e9   : > { %v1335_v14 = vadd.f32 %v1334_v35, %v1221_v30 }
 0x2ea   : > { %1700 = vst [vmem:[#allocation2 + $0x1f8] sm:$0xff] %v1636_v29 }
 0x2eb   : > { %v1447_v40 = vpop.f32.mrf.mxu2  ;;  %v1560_v15 = vpop.f32.mrf.mxu3 }
 0x2ec   : > { %v1448_v22 = vadd.f32 %v1447_v40, %v1335_v14 }
 0x2ee   : > { %v1561_v43 = vadd.f32 %v1560_v15, %v1448_v22  ;;  %v428_v22 = vld [vmem:[#allocation2 + $0x178] sm:$0xff] }
 0x2f0   : > { %v1638_v44 = vadd.f32 %v1561_v43, %v414_v23  ;;  %v1224_v45 = vpop.f32.mrf.mxu0  ;;  %v1337_v46 = vpop.f32.mrf.mxu1 }
 0x2f1   : > { %v1338_v33 = vadd.f32 %v1337_v46, %v1224_v45 }
 0x2f2   : > { %1702 = vst [vmem:[#allocation2 + $0x128] sm:$0xff] %v1638_v44 }
 0x2f3   : > { %v1450_v47 = vpop.f32.mrf.mxu2  ;;  %v1563_v34 = vpop.f32.mrf.mxu3 }
 0x2f4   : > { %v1451_v41 = vadd.f32 %v1450_v47, %v1338_v33 }
 0x2f6   : > { %v1564_v52 = vadd.f32 %v1563_v34, %v1451_v41  ;;  %v430_v41 = vld [vmem:[#allocation2 + $0x190] sm:$0xff] }
 0x2f8   : > { %v1640_v53 = vadd.f32 %v1564_v52, %v416_v42  ;;  %v1227_v18 = vpop.f32.mrf.mxu0  ;;  %v1340_v56 = vpop.f32.mrf.mxu1 }
 0x2f9   : > { %v1341_v50 = vadd.f32 %v1340_v56, %v1227_v18 }
 0x2fa   : > { %1704 = vst [vmem:[#allocation2 + $0x1f0] sm:$0xff] %v1640_v53 }
 0x2fb   : > { %v1453_v19 = vpop.f32.mrf.mxu2  ;;  %v1566_v51 = vpop.f32.mrf.mxu3 }
 0x2fc   : > { %v1454_v58 = vadd.f32 %v1453_v19, %v1341_v50 }
 0x2fe   : > { %v1567_v24 = vadd.f32 %v1566_v51, %v1454_v58  ;;  %v432_v58 = vld [vmem:[#allocation2 + $0x38] sm:$0xff] }
 0x300   : > { %v1642_v25 = vadd.f32 %v1567_v24, %v418_v59  ;;  %v1230_v57 = vpop.f32.mrf.mxu0  ;;  %v1343_v60 = vpop.f32.mrf.mxu1 }
 0x301   : > { %v1344_v5 = vadd.f32 %v1343_v60, %v1230_v57 }
 0x302   : > { %1706 = vst [vmem:[#allocation2 + $0x78] sm:$0xff] %v1642_v25 }
 0x303   : > { %v1456_v63 = vpop.f32.mrf.mxu2  ;;  %v1569_v6 = vpop.f32.mrf.mxu3 }
 0x304   : > { %v1457_v11 = vadd.f32 %v1456_v63, %v1344_v5 }
 0x306   : > { %v1570_v0 = vadd.f32 %v1569_v6, %v1457_v11  ;;  %v434_v11 = vld [vmem:[#allocation2 + $0x1c0] sm:$0xff] }
 0x308   : > { %v1644_v31 = vadd.f32 %v1570_v0, %v420_v12  ;;  %v1233_v1 = vpop.f32.mrf.mxu0  ;;  %v1346_v32 = vpop.f32.mrf.mxu1 }
 0x309   : > { %v1347_v37 = vadd.f32 %v1346_v32, %v1233_v1 }
 0x30a   : > { %1708 = vst [vmem:[#allocation2 + $0x90] sm:$0xff] %v1644_v31 }
 0x30b   : > { %v1459_v38 = vpop.f32.mrf.mxu2  ;;  %v1572_v26 = vpop.f32.mrf.mxu3 }
 0x30c   : > { %v1460_v2 = vadd.f32 %v1459_v38, %v1347_v37 }
 0x30e   : > { %v1573_v27 = vadd.f32 %v1572_v26, %v1460_v2  ;;  %v436_v2 = vld [vmem:[#allocation2 + $0x10] sm:$0xff] }
 0x310   : > { %v1646_v8 = vadd.f32 %v1573_v27, %v422_v7  ;;  %v1236_v9 = vpop.f32.mrf.mxu0  ;;  %v1349_v48 = vpop.f32.mrf.mxu1 }
 0x311   : > { %v1350_v10 = vadd.f32 %v1349_v48, %v1236_v9 }
 0x312   : > { %1710 = vst [vmem:[#allocation2 + $0xd0] sm:$0xff] %v1646_v8 }
 0x313   : > { %v1462_v36 = vpop.f32.mrf.mxu2  ;;  %v1575_v39 = vpop.f32.mrf.mxu3 }
 0x314   : > { %v1463_v49 = vadd.f32 %v1462_v36, %v1350_v10 }
 0x316   : > { %v1576_v55 = vadd.f32 %v1575_v39, %v1463_v49  ;;  %v438_v49 = vld [vmem:[#allocation2 + $0xa0] sm:$0xff] }
 0x318   : > { %v1648_v13 = vadd.f32 %v1576_v55, %v424_v54  ;;  %v1239_v16 = vpop.f32.mrf.mxu0  ;;  %v1352_v17 = vpop.f32.mrf.mxu1 }
 0x319   : > { %v1353_v20 = vadd.f32 %v1352_v17, %v1239_v16 }
 0x31a   : > { %1712 = vst [vmem:[#allocation2 + $0x88] sm:$0xff] %v1648_v13 }
 0x31b   : > { %v1465_v61 = vpop.f32.mrf.mxu2  ;;  %v1578_v21 = vpop.f32.mrf.mxu3 }
 0x31c   : > { %v1466_v62 = vadd.f32 %v1465_v61, %v1353_v20 }
 0x31e   : > { %v1579_v4 = vadd.f32 %v1578_v21, %v1466_v62 }
 0x320   : > { %v1650_v28 = vadd.f32 %v1579_v4, %v426_v3  ;;  %v1242_v29 = vpop.f32.mrf.mxu0  ;;  %v1355_v30 = vpop.f32.mrf.mxu1 }
 0x321   : > { %v1356_v35 = vadd.f32 %v1355_v30, %v1242_v29 }
 0x322   : > { %1714 = vst [vmem:[#allocation2 + $0x1c8] sm:$0xff] %v1650_v28 }
 0x323   : > { %v1468_v14 = vpop.f32.mrf.mxu2  ;;  %v1581_v40 = vpop.f32.mrf.mxu3 }
 0x324   : > { %v1469_v15 = vadd.f32 %v1468_v14, %v1356_v35 }
 0x326   : > { %v1582_v23 = vadd.f32 %v1581_v40, %v1469_v15 }
 0x328   : > { %v1652_v43 = vadd.f32 %v1582_v23, %v428_v22  ;;  %v1245_v44 = vpop.f32.mrf.mxu0  ;;  %v1358_v45 = vpop.f32.mrf.mxu1 }
 0x329   : > { %v1359_v46 = vadd.f32 %v1358_v45, %v1245_v44 }
 0x32a   : > { %1716 = vst [vmem:[#allocation2 + $0x178] sm:$0xff] %v1652_v43 }
 0x32b   : > { %v1471_v33 = vpop.f32.mrf.mxu2  ;;  %v1584_v47 = vpop.f32.mrf.mxu3 }
 0x32c   : > { %v1472_v34 = vadd.f32 %v1471_v33, %v1359_v46 }
 0x32e   : > { %v1585_v42 = vadd.f32 %v1584_v47, %v1472_v34 }
 0x330   : > { %v1654_v52 = vadd.f32 %v1585_v42, %v430_v41  ;;  %v1248_v53 = vpop.f32.mrf.mxu0  ;;  %v1361_v18 = vpop.f32.mrf.mxu1 }
 0x331   : > { %v1362_v56 = vadd.f32 %v1361_v18, %v1248_v53 }
 0x332   : > { %1718 = vst [vmem:[#allocation2 + $0x190] sm:$0xff] %v1654_v52 }
 0x333   : > { %v1474_v50 = vpop.f32.mrf.mxu2  ;;  %v1587_v19 = vpop.f32.mrf.mxu3 }
 0x334   : > { %v1475_v51 = vadd.f32 %v1474_v50, %v1362_v56 }
 0x336   : > { %v1588_v59 = vadd.f32 %v1587_v19, %v1475_v51 }
 0x338   : > { %v1656_v24 = vadd.f32 %v1588_v59, %v432_v58  ;;  %v1251_v25 = vpop.f32.mrf.mxu0  ;;  %v1364_v57 = vpop.f32.mrf.mxu1 }
 0x339   : > { %v1365_v60 = vadd.f32 %v1364_v57, %v1251_v25 }
 0x33a   : > { %1720 = vst [vmem:[#allocation2 + $0x38] sm:$0xff] %v1656_v24 }
 0x33b   : > { %v1477_v5 = vpop.f32.mrf.mxu2  ;;  %v1590_v63 = vpop.f32.mrf.mxu3 }
 0x33c   : > { %v1478_v6 = vadd.f32 %v1477_v5, %v1365_v60 }
 0x33e   : > { %v1591_v12 = vadd.f32 %v1590_v63, %v1478_v6 }
 0x340   : > { %v1658_v0 = vadd.f32 %v1591_v12, %v434_v11  ;;  %v1254_v31 = vpop.f32.mrf.mxu0  ;;  %v1367_v1 = vpop.f32.mrf.mxu1 }
 0x341   : > { %v1368_v32 = vadd.f32 %v1367_v1, %v1254_v31 }
 0x342   : > { %1722 = vst [vmem:[#allocation2 + $0x1c0] sm:$0xff] %v1658_v0 }
 0x343   : > { %v1480_v37 = vpop.f32.mrf.mxu2  ;;  %v1593_v38 = vpop.f32.mrf.mxu3 }
 0x344   : > { %v1481_v26 = vadd.f32 %v1480_v37, %v1368_v32 }
 0x346   : > { %v1594_v7 = vadd.f32 %v1593_v38, %v1481_v26 }
 0x348   : > { %v1660_v27 = vadd.f32 %v1594_v7, %v436_v2  ;;  %v1257_v8 = vpop.f32.mrf.mxu0  ;;  %v1370_v9 = vpop.f32.mrf.mxu1 }
 0x349   : > { %v1371_v48 = vadd.f32 %v1370_v9, %v1257_v8 }
 0x34a   : > { %1724 = vst [vmem:[#allocation2 + $0x10] sm:$0xff] %v1660_v27 }
 0x34b   : > { %v1483_v10 = vpop.f32.mrf.mxu2  ;;  %v1596_v36 = vpop.f32.mrf.mxu3 }
 0x34c   : > { %v1484_v39 = vadd.f32 %v1483_v10, %v1371_v48 }
 0x34e   : > { %v1597_v54 = vadd.f32 %v1596_v36, %v1484_v39  ;;  %1730 = sbr.rel (%p2112_p12) target bundleno = 920 (0x398), region = 52 }
 0x350   : > { %v1662_v55 = vadd.f32 %v1597_v54, %v438_v49 }
 0x352   : > { %1726 = vst [vmem:[#allocation2 + $0xa0] sm:$0xff] %v1662_v55 }
 0x353   : > { %v1731_v13 = vld [vmem:[#allocation2 + $0xb0] sm:$0xff]  ;;  %v1795_v16 = vld [vmem:[%s266_s6] sm:$0x3]  ;;  %v1733_v21 = vld [vmem:[#allocation2 + $0xd8] sm:$0xff] }
 0x354   : > { %v1732_v17 = vld [vmem:[#allocation2 + $0x1b0] sm:$0xff]  ;;  %v3563_v20 = vperm.slane %v1795_v16, 0  ;;  %v3565_v61 = vperm.slane %v1795_v16, 1  ;;  %v1734_v62 = vld [vmem:[#allocation2 + $0x18] sm:$0xff]  ;;  %v1736_v30 = vld [vmem:[#allocation2 + $0x168] sm:$0xff] }
 0x355   : > { %v1735_v3 = vld [vmem:[#allocation2 + $0x50] sm:$0xff]  ;;  %v1738_v15 = vld [vmem:[#allocation2 + $0x48] sm:$0xff]  ;;  %v1739_v23 = vld [vmem:[#allocation2 + $0x180] sm:$0xff] }
 0x356   : > { %v1801_v4 = vadd.f32 %v3563_v20, %v1731_v13  ;;  %v1802_v28 = vadd.f32 %v3565_v61, %v1732_v17  ;;  %v1803_v29 = vadd.f32 %v3563_v20, %v1733_v21  ;;  %v1804_v35 = vadd.f32 %v3565_v61, %v1734_v62  ;;  %v1737_v14 = vld [vmem:[#allocation2 + $0x130] sm:$0xff]  ;;  %v1741_v46 = vld [vmem:[#allocation2 + $0x118] sm:$0xff]  ;;  %v1743_v41 = vld [vmem:[#allocation2 + $0x120] sm:$0xff] }
 0x357   : > { %v1805_v40 = vadd.f32 %v3563_v20, %v1735_v3  ;;  %v1806_v22 = vadd.f32 %v3565_v61, %v1736_v30  ;;  %v1807_v43 = vadd.f32 %v3563_v20, %v1737_v14  ;;  %v1740_v44 = vld [vmem:[#allocation2 + $0x110] sm:$0xff]  ;;  %v1808_v45 = vadd.f32 %v3565_v61, %v1738_v15  ;;  %v1742_v47 = vld [vmem:[#allocation2 + $0x98] sm:$0xff]  ;;  %v1745_v18 = vld [vmem:[#allocation2 + $0x108] sm:$0xff] }
 0x358   : > { %1865 = vst [vmem:[%s3001_s8] sm:$0xff] %v1801_v4  ;;  %v1809_v33 = vadd.f32 %v3563_v20, %v1739_v23  ;;  %v1810_v34 = vadd.f32 %v3565_v61, %v1740_v44  ;;  %v1811_v42 = vadd.f32 %v3563_v20, %v1741_v46  ;;  %v1744_v52 = vld [vmem:[#allocation2 + $0x150] sm:$0xff]  ;;  %v1812_v53 = vadd.f32 %v3565_v61, %v1742_v47  ;;  %v1746_v50 = vld [vmem:[#allocation2 + $0x60] sm:$0xff]  ;;  %v1748_v59 = vld [vmem:[#allocation2 + $0x188] sm:$0xff] }
 0x359   : > { %1866 = vst [vmem:[%s3001_s8 + $0x8] sm:$0xff] %v1802_v28  ;;  %v1813_v56 = vadd.f32 %v3563_v20, %v1743_v41  ;;  %v1814_v19 = vadd.f32 %v3565_v61, %v1744_v52  ;;  %v1747_v51 = vld [vmem:[#allocation2 + $0xe0] sm:$0xff]  ;;  %v1815_v58 = vadd.f32 %v3563_v20, %v1745_v18  ;;  %v1816_v24 = vadd.f32 %v3565_v61, %v1746_v50  ;;  %v1749_v25 = vld [vmem:[#allocation2 + $0x138] sm:$0xff]  ;;  %v1752_v11 = vld [vmem:[#allocation2 + $0x1a8] sm:$0xff] }
 0x35a   : > { %1867 = vst [vmem:[%s3001_s8 + $0x10] sm:$0xff] %v1803_v29  ;;  %v1817_v57 = vadd.f32 %v3563_v20, %v1747_v51  ;;  %v1750_v60 = vld [vmem:[#allocation2 + $0x140] sm:$0xff]  ;;  %v1818_v5 = vadd.f32 %v3565_v61, %v1748_v59  ;;  %v1819_v6 = vadd.f32 %v3563_v20, %v1749_v25  ;;  %v1753_v0 = vld [vmem:[#allocation2 + $0x1b8] sm:$0xff]  ;;  %v1754_v1 = vld [vmem:[#allocation2 + $0x28] sm:$0xff]  ;;  %v1822_v32 = vadd.f32 %v3565_v61, %v1752_v11 }
 0x35b   : > { %1868 = vst [vmem:[%s3001_s8 + $0x18] sm:$0xff] %v1804_v35  ;;  %v1751_v63 = vld [vmem:[#allocation2 + $0x80] sm:$0xff]  ;;  %v1820_v12 = vadd.f32 %v3565_v61, %v1750_v60  ;;  %v1755_v37 = vld [vmem:[#allocation2 + $0x1e8] sm:$0xff]  ;;  %v1823_v38 = vadd.f32 %v3563_v20, %v1753_v0  ;;  %v1756_v26 = vld [vmem:[#allocation2 + $0xf8] sm:$0xff]  ;;  %v1824_v2 = vadd.f32 %v3565_v61, %v1754_v1 }
 0x35c   : > { %1869 = vst [vmem:[%s3001_s8 + $0x20] sm:$0xff] %v1805_v40  ;;  %v1821_v31 = vadd.f32 %v3563_v20, %v1751_v63  ;;  %v1757_v7 = vld [vmem:[#allocation2 + $0x160] sm:$0xff]  ;;  %v1825_v27 = vadd.f32 %v3563_v20, %v1755_v37  ;;  %v1758_v8 = vld [vmem:[#allocation2 + $0x30] sm:$0xff]  ;;  %v1826_v9 = vadd.f32 %v3565_v61, %v1756_v26  ;;  %v1762_v55 = vld [vmem:[#allocation2 + $0x8] sm:$0xff] }
 0x35d   : > { %1870 = vst [vmem:[%s3001_s8 + $0x28] sm:$0xff] %v1806_v22  ;;  %v1759_v48 = vld [vmem:[#allocation2 + $0x1e0] sm:$0xff]  ;;  %v1827_v10 = vadd.f32 %v3563_v20, %v1757_v7  ;;  %v1828_v39 = vadd.f32 %v3565_v61, %v1758_v8  ;;  %v1761_v49 = vld [vmem:[#allocation2 + $0xf0] sm:$0xff]  ;;  %v1763_v16 = vld [vmem:[#allocation2 + $0x148] sm:$0xff]  ;;  %v1832_v62 = vadd.f32 %v3565_v61, %v1762_v55 }
 0x35e   : > { %1871 = vst [vmem:[%s3001_s8 + $0x30] sm:$0xff] %v1807_v43  ;;  %v1760_v36 = vld [vmem:[#allocation2] sm:$0xff]  ;;  %v1829_v54 = vadd.f32 %v3563_v20, %v1759_v48  ;;  %v1831_v17 = vadd.f32 %v3563_v20, %v1761_v49  ;;  %v1764_v21 = vld [vmem:[#allocation2 + $0x1d0] sm:$0xff]  ;;  %v1833_v4 = vadd.f32 %v3563_v20, %v1763_v16  ;;  %v1766_v28 = vld [vmem:[#allocation2 + $0xc8] sm:$0xff] }
 0x35f   : > { %1872 = vst [vmem:[%s3001_s8 + $0x38] sm:$0xff] %v1808_v45  ;;  %v1830_v13 = vadd.f32 %v3565_v61, %v1760_v36  ;;  %v1765_v3 = vld [vmem:[#allocation2 + $0x100] sm:$0xff]  ;;  %v1834_v29 = vadd.f32 %v3565_v61, %v1764_v21  ;;  %v1768_v14 = vld [vmem:[#allocation2 + $0x1f8] sm:$0xff]  ;;  %v1836_v40 = vadd.f32 %v3565_v61, %v1766_v28  ;;  %v1770_v23 = vld [vmem:[#allocation2 + $0x128] sm:$0xff] }
 0x360   : > { %1873 = vst [vmem:[%s3001_s8 + $0x40] sm:$0xff] %v1809_v33  ;;  %v1767_v30 = vld [vmem:[#allocation2 + $0x40] sm:$0xff]  ;;  %v1835_v35 = vadd.f32 %v3563_v20, %v1765_v3  ;;  %v1838_v43 = vadd.f32 %v3565_v61, %v1768_v14  ;;  %v1772_v46 = vld [vmem:[#allocation2 + $0x1f0] sm:$0xff]  ;;  %v1840_v33 = vadd.f32 %v3565_v61, %v1770_v23  ;;  %v1773_v47 = vld [vmem:[#allocation2 + $0xe8] sm:$0xff] }
 0x361   : > { %1874 = vst [vmem:[%s3001_s8 + $0x48] sm:$0xff] %v1810_v34  ;;  %v1769_v15 = vld [vmem:[#allocation2 + $0x20] sm:$0xff]  ;;  %v1837_v22 = vadd.f32 %v3563_v20, %v1767_v30  ;;  %v1774_v41 = vld [vmem:[#allocation2 + $0x78] sm:$0xff]  ;;  %v1775_v52 = vld [vmem:[#allocation2 + $0x70] sm:$0xff] }
 0x362   : > { %1875 = vst [vmem:[%s3001_s8 + $0x50] sm:$0xff] %v1811_v42  ;;  %v1771_v44 = vld [vmem:[#allocation2 + $0x1a0] sm:$0xff]  ;;  %v1839_v45 = vadd.f32 %v3563_v20, %v1769_v15  ;;  %v1842_v42 = vadd.f32 %v3565_v61, %v1772_v46  ;;  %v1776_v18 = vld [vmem:[#allocation2 + $0x90] sm:$0xff]  ;;  %v1777_v50 = vld [vmem:[#allocation2 + $0x1d8] sm:$0xff] }
 0x363   : > { %1876 = vst [vmem:[%s3001_s8 + $0x58] sm:$0xff] %v1812_v53  ;;  %v1841_v34 = vadd.f32 %v3563_v20, %v1771_v44  ;;  %v1843_v53 = vadd.f32 %v3563_v20, %v1773_v47  ;;  %v1778_v51 = vld [vmem:[#allocation2 + $0xd0] sm:$0xff]  ;;  %v1779_v59 = vld [vmem:[#allocation2 + $0xb8] sm:$0xff]  ;;  %v1780_v25 = vld [vmem:[#allocation2 + $0x88] sm:$0xff] }
 0x364   : > { %1877 = vst [vmem:[%s3001_s8 + $0x60] sm:$0xff] %v1813_v56  ;;  %v1844_v56 = vadd.f32 %v3565_v61, %v1774_v41  ;;  %v1781_v60 = vld [vmem:[#allocation2 + $0xa8] sm:$0xff]  ;;  %v1783_v11 = vld [vmem:[#allocation2 + $0x170] sm:$0xff]  ;;  %v1784_v0 = vld [vmem:[#allocation2 + $0x178] sm:$0xff] }
 0x365   : > { %1878 = vst [vmem:[%s3001_s8 + $0x68] sm:$0xff] %v1814_v19  ;;  %v1845_v19 = vadd.f32 %v3563_v20, %v1775_v52  ;;  %v1782_v63 = vld [vmem:[#allocation2 + $0x1c8] sm:$0xff]  ;;  %v1786_v37 = vld [vmem:[#allocation2 + $0x190] sm:$0xff]  ;;  %v1787_v26 = vld [vmem:[#allocation2 + $0x198] sm:$0xff] }
 0x366   : > { %1879 = vst [vmem:[%s3001_s8 + $0x70] sm:$0xff] %v1815_v58  ;;  %v1846_v58 = vadd.f32 %v3565_v61, %v1776_v18  ;;  %v1785_v1 = vld [vmem:[#allocation2 + $0x68] sm:$0xff]  ;;  %v1788_v7 = vld [vmem:[#allocation2 + $0x38] sm:$0xff]  ;;  %v1789_v8 = vld [vmem:[#allocation2 + $0xc0] sm:$0xff] }
 0x367   : > { %1880 = vst [vmem:[%s3001_s8 + $0x78] sm:$0xff] %v1816_v24  ;;  %v1847_v24 = vadd.f32 %v3563_v20, %v1777_v50  ;;  %v1790_v48 = vld [vmem:[#allocation2 + $0x1c0] sm:$0xff]  ;;  %v1791_v36 = vld [vmem:[#allocation2 + $0x158] sm:$0xff]  ;;  %v1792_v49 = vld [vmem:[#allocation2 + $0x10] sm:$0xff] }
 0x368   : > { %1881 = vst [vmem:[%s3001_s8 + $0x80] sm:$0xff] %v1817_v57  ;;  %v1848_v57 = vadd.f32 %v3565_v61, %v1778_v51  ;;  %v1793_v55 = vld [vmem:[#allocation2 + $0x58] sm:$0xff]  ;;  %v1794_v16 = vld [vmem:[#allocation2 + $0xa0] sm:$0xff] }
 0x369   : > { %1882 = vst [vmem:[%s3001_s8 + $0x88] sm:$0xff] %v1818_v5  ;;  %v1849_v5 = vadd.f32 %v3563_v20, %v1779_v59  ;;  %v1863_v21 = vadd.f32 %v3563_v20, %v1793_v55 }
 0x36a   : > { %1883 = vst [vmem:[%s3001_s8 + $0x90] sm:$0xff] %v1819_v6  ;;  %v1850_v6 = vadd.f32 %v3565_v61, %v1780_v25 }
 0x36b   : > { %1884 = vst [vmem:[%s3001_s8 + $0x98] sm:$0xff] %v1820_v12  ;;  %v1851_v12 = vadd.f32 %v3563_v20, %v1781_v60 }
 0x36c   : > { %1885 = vst [vmem:[%s3001_s8 + $0xa0] sm:$0xff] %v1821_v31  ;;  %v1852_v31 = vadd.f32 %v3565_v61, %v1782_v63 }
 0x36d   : > { %1886 = vst [vmem:[%s3001_s8 + $0xa8] sm:$0xff] %v1822_v32  ;;  %v1853_v32 = vadd.f32 %v3563_v20, %v1783_v11 }
 0x36e   : > { %1887 = vst [vmem:[%s3001_s8 + $0xb0] sm:$0xff] %v1823_v38  ;;  %v1854_v38 = vadd.f32 %v3565_v61, %v1784_v0 }
 0x36f   : > { %1888 = vst [vmem:[%s3001_s8 + $0xb8] sm:$0xff] %v1824_v2  ;;  %v1855_v2 = vadd.f32 %v3563_v20, %v1785_v1 }
 0x370   : > { %1889 = vst [vmem:[%s3001_s8 + $0xc0] sm:$0xff] %v1825_v27  ;;  %v1856_v27 = vadd.f32 %v3565_v61, %v1786_v37 }
 0x371   : > { %1890 = vst [vmem:[%s3001_s8 + $0xc8] sm:$0xff] %v1826_v9  ;;  %v1857_v9 = vadd.f32 %v3563_v20, %v1787_v26 }
 0x372   : > { %1891 = vst [vmem:[%s3001_s8 + $0xd0] sm:$0xff] %v1827_v10  ;;  %v1858_v10 = vadd.f32 %v3565_v61, %v1788_v7 }
 0x373   : > { %1892 = vst [vmem:[%s3001_s8 + $0xd8] sm:$0xff] %v1828_v39  ;;  %v1859_v39 = vadd.f32 %v3563_v20, %v1789_v8 }
 0x374   : > { %1893 = vst [vmem:[%s3001_s8 + $0xe0] sm:$0xff] %v1829_v54  ;;  %v1860_v54 = vadd.f32 %v3565_v61, %v1790_v48 }
 0x375   : > { %1894 = vst [vmem:[%s3001_s8 + $0xe8] sm:$0xff] %v1830_v13  ;;  %v1861_v13 = vadd.f32 %v3563_v20, %v1791_v36 }
 0x376   : > { %1895 = vst [vmem:[%s3001_s8 + $0xf0] sm:$0xff] %v1831_v17  ;;  %v1862_v17 = vadd.f32 %v3565_v61, %v1792_v49 }
 0x377   : > { %1896 = vst [vmem:[%s3001_s8 + $0xf8] sm:$0xff] %v1832_v62  ;;  %v1864_v62 = vadd.f32 %v3565_v61, %v1794_v16 }
 0x378   : > { %1897 = vst [vmem:[%s3001_s8 + $0x100] sm:$0xff] %v1833_v4 }
 0x379   : > { %1898 = vst [vmem:[%s3001_s8 + $0x108] sm:$0xff] %v1834_v29 }
 0x37a   : > { %1899 = vst [vmem:[%s3001_s8 + $0x110] sm:$0xff] %v1835_v35 }
 0x37b   : > { %1900 = vst [vmem:[%s3001_s8 + $0x118] sm:$0xff] %v1836_v40 }
 0x37c   : > { %1901 = vst [vmem:[%s3001_s8 + $0x120] sm:$0xff] %v1837_v22 }
 0x37d   : > { %1902 = vst [vmem:[%s3001_s8 + $0x128] sm:$0xff] %v1838_v43 }
 0x37e   : > { %1903 = vst [vmem:[%s3001_s8 + $0x130] sm:$0xff] %v1839_v45 }
 0x37f   : > { %1904 = vst [vmem:[%s3001_s8 + $0x138] sm:$0xff] %v1840_v33 }
 0x380   : > { %1905 = vst [vmem:[%s3001_s8 + $0x140] sm:$0xff] %v1841_v34 }
 0x381   : > { %1906 = vst [vmem:[%s3001_s8 + $0x148] sm:$0xff] %v1842_v42 }
 0x382   : > { %1907 = vst [vmem:[%s3001_s8 + $0x150] sm:$0xff] %v1843_v53 }
 0x383   : > { %1908 = vst [vmem:[%s3001_s8 + $0x158] sm:$0xff] %v1844_v56 }
 0x384   : > { %1909 = vst [vmem:[%s3001_s8 + $0x160] sm:$0xff] %v1845_v19 }
 0x385   : > { %1910 = vst [vmem:[%s3001_s8 + $0x168] sm:$0xff] %v1846_v58 }
 0x386   : > { %1911 = vst [vmem:[%s3001_s8 + $0x170] sm:$0xff] %v1847_v24 }
 0x387   : > { %1912 = vst [vmem:[%s3001_s8 + $0x178] sm:$0xff] %v1848_v57 }
 0x388   : > { %1913 = vst [vmem:[%s3001_s8 + $0x180] sm:$0xff] %v1849_v5 }
 0x389   : > { %1914 = vst [vmem:[%s3001_s8 + $0x188] sm:$0xff] %v1850_v6 }
 0x38a   : > { %1915 = vst [vmem:[%s3001_s8 + $0x190] sm:$0xff] %v1851_v12 }
 0x38b   : > { %1916 = vst [vmem:[%s3001_s8 + $0x198] sm:$0xff] %v1852_v31 }
 0x38c   : > { %1917 = vst [vmem:[%s3001_s8 + $0x1a0] sm:$0xff] %v1853_v32 }
 0x38d   : > { %1918 = vst [vmem:[%s3001_s8 + $0x1a8] sm:$0xff] %v1854_v38 }
 0x38e   : > { %1919 = vst [vmem:[%s3001_s8 + $0x1b0] sm:$0xff] %v1855_v2 }
 0x38f   : > { %1920 = vst [vmem:[%s3001_s8 + $0x1b8] sm:$0xff] %v1856_v27 }
 0x390   : > { %1921 = vst [vmem:[%s3001_s8 + $0x1c0] sm:$0xff] %v1857_v9 }
 0x391   : > { %1922 = vst [vmem:[%s3001_s8 + $0x1c8] sm:$0xff] %v1858_v10 }
 0x392   : > { %1923 = vst [vmem:[%s3001_s8 + $0x1d0] sm:$0xff] %v1859_v39 }
 0x393   : > { %1924 = vst [vmem:[%s3001_s8 + $0x1d8] sm:$0xff] %v1860_v54 }
 0x394   : > { %1925 = vst [vmem:[%s3001_s8 + $0x1e0] sm:$0xff] %v1861_v13 }
 0x395   : > { %1926 = vst [vmem:[%s3001_s8 + $0x1e8] sm:$0xff] %v1862_v17 }
 0x396   : > { %1927 = vst [vmem:[%s3001_s8 + $0x1f0] sm:$0xff] %v1863_v21 }
 0x397   : > { %1928 = vst [vmem:[%s3001_s8 + $0x1f8] sm:$0xff] %v1864_v62 }
 0x398 PF: > { %s3837_s13 = sld [smem:[#allocation19_spill]]  ;;  %s1945_s0 = sshll.u32 %s3001_s8, 4  ;;  %s1946_s0 = int_to_ptr.vmem [resolvable:$true] %s1945_s0 }
 0x399   : > { %s3838_s10 = sld [smem:[#allocation20_spill]]  ;;  %s1930_s25 = scalar_lea.sflag [#allocation5], %s297_s7 }
 0x39a   : > { %s3840_s4 = sld [smem:[#allocation31_spill]] }
 0x39e   : > { %s2115_s26 = sshll.u32 %s3837_s13, 1 }
 0x39f   : > { %s2122_s29 = sshll.u32 %s3838_s10, 7 }
 0x3a0   : > { %s1942_s2 = sadd.s32 %s2122_s29, %s2115_s26  ;;  %s2510_s10 = scalar_lea.hbm %s3840_s4, 2048 }
 0x3a1   : > { %s2117_s15 = sshll.u32 %s1942_s2, 3 }
 0x3a2   : > { %s1944_s6 = scalar_lea.hbm %s3840_s4, %s2117_s15 }
 0x3a3   : > { %s1947_s9 = sshll.u32 %s1944_s6, 4  ;;  %s1948_s9 = int_to_ptr.hbm [resolvable:$true] %s1947_s9 }
 0x3a4   : > { %s2504_s5 = sshra.s32 %s1948_s9, 4  ;;  %s2505_s5 = int_to_ptr.hbm [resolvable:$true] %s2504_s5 }
 0x3a5   : > { %s2506_s21 = scalar_lea.hbm %s2505_s5, 512  ;;  %p2511_p4 = scmp.lt.s32.totalorder %s2505_s5, %s3840_s4 }
 0x3a6   : > { %p2507_p13 = scmp.ne.s32.totalorder %s2505_s5, %s2506_s21  ;;  %p2512_p0 = scmp.lt.s32.totalorder %s2510_s10, %s2506_s21 }
 0x3a8   : > { %p2508_p2 = pnand %p2507_p13, %p2954_p6  ;;  %p2513_p7 = por %p2512_p0, %p2511_p4 }
 0x3aa   : > { %p2509_p3 = pneg %p2508_p2 }
 0x3ac   : > { %p2514_p5 = pnand %p2513_p7, %p2509_p3 }
 0x3ae   : > { %2517 = shalt.err (!%p2514_p5)
}
 0x3af   : > { %s2692_s7 = smov 256   ;;  %s2693_s27 = smov 512  }
 0x3b0   : > { %s2694_s2 = smov 16  }
 0x3b1   : > { %2129 = dma.vmem_to_hbm [thread:$0]  (%p2954_p6), %s1946_s0, 8192, %s1948_s9, %s1930_s25, %s2692_s7, %s2693_s27, %s2694_s2  }
 0x3b2 PF: > { %s3841_s15 = sld [smem:[#allocation14_spill]]  ;;  %p2146_p9 = scmp.ge.s32.totalorder %s2684_s30, 2 }
 0x3b4   : > { %p2142_p8 = pnand %p2146_p9, %p2964_p1 }
 0x3b6   : > { %p2143_p10 = pneg %p2142_p8 }
 0x3b8   : > { %s1962_s11 = sand.u32 1, %s3841_s15  }
 0x3b9   : > { %s1963_s20 = scalar_lea.sflag [#allocation5], %s1962_s11 }
 0x3ba   : > { %2607 = dma.done.wait (%p2143_p10), %s1963_s20, 8192  }
 0x3bb   : > { %2609 = vsyncadd (%p2143_p10), %s1963_s20, 4294959104  ;;  %s22_s30 = sadd.s32 1, %s2684_s30   ;;  %s3843_s12 = sld [smem:[#allocation15_spill]] }
 0x3bc   : > { %p3718_p11 = scmp.ge.s32.totalorder %s22_s30, 10   ;;  %s3844_s0 = sld [smem:[#allocation17_spill]] }
 0x3bd   : > { %s3845_s20 = sld [smem:[#allocation25_spill]]  ;;  %s3850_s13 = smov %s2620_s14 }
 0x3be   : > { %s3846_s9 = sld [smem:[#allocation21_spill]]  ;;  %s3852_s14 = smov %s2901_s24 }
 0x3bf   : > { %s3847_s26 = sld [smem:[#allocation22_spill]]  ;;  %s3853_s15 = smov %s2628_s16 }
 0x3c0   : > { %s3848_s27 = sld [smem:[#allocation23_spill]]  ;;  %s3854_s16 = smov %s2632_s17 }
 0x3c1   : > { %s3849_s5 = sld [smem:[#allocation24_spill]]  ;;  %s3855_s17 = smov %s2935_s3 }
 0x3c2   : > { %s3851_s29 = sld [smem:[#allocation27_spill]]  ;;  %s3856_s18 = smov %s2640_s19 }
 0x3c3   : > { %s3857_s19 = smov %s3844_s0  ;;  %s3858_s21 = smov %s2652_s22 }
 0x3c4   : > { %s3859_s22 = smov %s2656_s23  ;;  %s3860_s23 = smov %s2898_s1 }
 0x3c5   : > { %s3861_s24 = smov %s3846_s9  ;;  %s3862_s25 = smov %s2676_s28 }
 0x3c6   :  { %21 = sbr.rel (!%p3718_p11) target bundleno = 20 (0x14), region = 109 }
 0x3c7   : > { %s3863_s28 = smov %s3849_s5 }
 0x3cb   :  { %1969 = vsyncpa [#allocation4], 1 }
 0x3cc   :  { %1971 = vsyncpa [#allocation4 + $0x1], 1 }
 0x3cd   :  { %1972 = vsyncpa [#allocation7], 1 }
 0x3ce   :  { %1974 = vsyncpa [#allocation7 + $0x1], 1 }
 0x3cf   :  { %1975 = vsyncpa [#allocation5], 1 }
 0x3d0   :  { %1977 = vsyncpa [#allocation5 + $0x1], 1 }

</bundles_post_ra>
